<compile_context>
chip_gen: v5e
topology: v5e:2x2
jax: 0.10.0
libtpu: 0.0.40
codegen_flags: <defaults>
</compile_context>

<pallas_src>
import functools
import math

import jax
import jax.numpy as jnp
from jax.experimental import pallas as pl
from jax.experimental.pallas import tpu as pltpu


# --------------------------------------------------------------------------
# Fused kernel: LRULayer + PositionwiseFeedForward on a (M, D) row slab
# --------------------------------------------------------------------------
def lru_block_kernel(x_ref, m_ref, pw_ref, vec_ref,
                     win_ref, wout_ref, w1_ref, w2_ref,
                     o_ref, hr_scr, hi_scr,
                     *, log2_L, seq_len, block_loop_max):
    M, D = x_ref.shape
    H = win_ref.shape[1]
    FF = w1_ref.shape[1]
    L = seq_len
    PW = max(L // 2, 1)               # row offset of the imag half of pw_ref

    # packed (1, .) vectors: [bin, gamma, bout, ln1_g, ln1_b, b1, b2, ln2_g, ln2_b]
    bin_ = vec_ref[0:1, :H]
    gam = vec_ref[1:2, :H]
    bout = vec_ref[2:3, :D]
    ln1g = vec_ref[3:4, :D]
    ln1b = vec_ref[4:5, :D]
    b1 = vec_ref[5:6, :FF]
    b2 = vec_ref[6:7, :D]
    ln2g = vec_ref[7:8, :D]
    ln2b = vec_ref[8:9, :D]

    x = x_ref[...]                                     # (M, D) f32

    # ---- in_proj (complex Linear with zero-imag weights) * gamma -----------
    hr_scr[...] = (jnp.dot(x.astype(jnp.bfloat16), win_ref[...],
                           preferred_element_type=jnp.float32)
                   + bin_) * gam                       # real part; imag starts 0

    need_imag = log2_L >= 2
    if need_imag:
        hi_scr[...] = jnp.zeros_like(hi_scr)

    # ---- block-doubling parallel scan (exact port of lru_parallel) ---------
    # Level i (blocks of blk = 2^i rows): second half of each block gets
    #   += lamb^(1..blk/2) * h[block, blk/2-1] * mask[block, blk/2-1]
    # Only the second halves are read-modified-written (no zero-half work, no
    # (nb, blk, H) reshapes of the slab).
    for i in range(1, log2_L + 1):
        blk = 1 << i
        half = blk >> 1
        nb = M // blk
        first = (i == 1)                               # imag state is still 0
        write_imag = need_imag and (i < log2_L)        # last level's imag is dead

        if nb <= block_loop_max:
            # few blocks: contiguous per-block ref slices
            p_r = pw_ref[0:half, :]                    # lamb^1..lamb^half (real)
            p_i = pw_ref[PW:PW + half, :]              # (imag)
            for j in range(nb):
                b0 = j * blk
                c = b0 + half - 1                      # carry / boundary row
                mb = m_ref[c:c + 1, :]                 # (1, H) boundary mask
                crm = hr_scr[c:c + 1, :] * mb
                if first:
                    upd_r = p_r * crm
                    upd_i = p_i * crm if write_imag else None
                else:
                    cim = hi_scr[c:c + 1, :] * mb
                    upd_r = p_r * crm - p_i * cim
                    upd_i = (p_i * crm + p_r * cim) if write_imag else None
                s0, s1 = b0 + half, b0 + blk
                hr_scr[s0:s1, :] = hr_scr[s0:s1, :] + upd_r
                if write_imag:
                    hi_scr[s0:s1, :] = hi_scr[s0:s1, :] + upd_i
        else:
            # many blocks: sublane-strided gather of all carry rows, then one
            # strided RMW per in-block offset (half of them per level)
            rows_c = pl.ds(half - 1, nb, stride=blk)
            mb = m_ref[rows_c, :]                      # (nb, H)
            crm = hr_scr[rows_c, :] * mb
            cim = None if first else hi_scr[rows_c, :] * mb
            for j in range(half):
                rows = pl.ds(half + j, nb, stride=blk)
                p_r = pw_ref[j:j + 1, :]
                p_i = pw_ref[PW + j:PW + j + 1, :]
                if cim is None:
                    upd_r = p_r * crm
                    upd_i = p_i * crm if write_imag else None
                else:
                    upd_r = p_r * crm - p_i * cim
                    upd_i = (p_i * crm + p_r * cim) if write_imag else None
                hr_scr[rows, :] = hr_scr[rows, :] + upd_r
                if write_imag:
                    hi_scr[rows, :] = hi_scr[rows, :] + upd_i

    # ---- out_proj (real part only; imag weights are zero) + residual + LN --
    h_r = hr_scr[...]
    y = jnp.dot(h_r.astype(jnp.bfloat16), wout_ref[...],
                preferred_element_type=jnp.float32) + bout
    z = y + x                                          # dropout = identity (eval)
    mu = jnp.mean(z, axis=-1, keepdims=True)
    var = jnp.mean((z - mu) ** 2, axis=-1, keepdims=True)
    z = (z - mu) * jax.lax.rsqrt(var + 1e-5) * ln1g + ln1b

    # ---- PositionwiseFeedForward: Linear -> exact GELU -> Linear -> +res -> LN
    hf = jnp.dot(z.astype(jnp.bfloat16), w1_ref[...],
                 preferred_element_type=jnp.float32) + b1
    hf = 0.5 * hf * (1.0 + jax.lax.erf(hf * (1.0 / math.sqrt(2.0))))
    y2 = jnp.dot(hf.astype(jnp.bfloat16), w2_ref[...],
                 preferred_element_type=jnp.float32) + b2
    z2 = y2 + z
    mu2 = jnp.mean(z2, axis=-1, keepdims=True)
    var2 = jnp.mean((z2 - mu2) ** 2, axis=-1, keepdims=True)
    o_ref[...] = (z2 - mu2) * jax.lax.rsqrt(var2 + 1e-5) * ln2g + ln2b


# --------------------------------------------------------------------------
# Host-side helpers
# --------------------------------------------------------------------------
def _lamb_power_table(lamb_r, lamb_i, L):
    """Stacked power table: rows [0,L/2) = Re(lamb^1..lamb^(L/2)),
    rows [L/2, L) = Im(...).  Built with the same doubling recurrence as the
    PyTorch reference (torch.cat((lamb, lamb * lamb[-1]), 0))."""
    H = lamb_r.shape[-1]
    pr = lamb_r.reshape(1, H).astype(jnp.float32)
    pi = lamb_i.reshape(1, H).astype(jnp.float32)
    if L < 2:
        return jnp.zeros((1, H), jnp.float32)
    while pr.shape[0] < L // 2:
        lr, li = pr[-1], pi[-1]
        nr = pr * lr - pi * li
        ni = pr * li + pi * lr
        pr = jnp.concatenate([pr, nr], axis=0)
        pi = jnp.concatenate([pi, ni], axis=0)
    return jnp.concatenate([pr, pi], axis=0)           # (2*(L//2), H)


def _pack_vectors(params, D, H, FF):
    """All nine (1, .) bias/LN/gamma vectors packed into one (9, max_width)
    f32 array (fewer per-step DMA descriptors / double-buffer allocations)."""
    rows = [(params["bin"], H), (params["gamma"], H), (params["bout"], D),
            (params["ln1_g"], D), (params["ln1_b"], D), (params["b1"], FF),
            (params["b2"], D), (params["ln2_g"], D), (params["ln2_b"], D)]
    W = max(D, H, FF)
    packed = [jnp.pad(v.reshape(1, w).astype(jnp.float32), ((0, 0), (0, W - w)))
              for v, w in rows]
    return jnp.concatenate(packed, axis=0)             # (9, W)


def _vmem_limit_bytes():
    """Per-generation VMEM plan: v7x has 64 MiB/TensorCore, v5e/v6e 128 MiB."""
    try:
        kind = jax.devices()[0].device_kind.lower()
    except Exception:
        kind = ""
    if "v7" in kind:
        return 56 * 1024 * 1024
    if "v5" in kind or "v6" in kind:
        return 100 * 1024 * 1024
    return 48 * 1024 * 1024


def _pick_batch_tile(B, L, D, H, FF, vmem_budget_bytes, target_rows=2048):
    """Smallest batch divisor whose (Bt*L)-row slab reaches target_rows within
    the VMEM plan.  Keeps >=2 grid steps when B >= 2 (v7x megacore) and falls
    back to the smallest valid divisor (never the whole batch) if even the
    smallest tile exceeds the budget."""
    max_bt = B // 2 if B >= 2 else B
    # residents independent of the tile: bf16 weights (single-buffered),
    # lamb power table and the packed bias/LN vector
    fixed = (2 * (D * H + H * D + D * FF + FF * D)
             + 4 * (2 * max(L // 2, 1) * H + 9 * max(D, H, FF)))
    avail = max(vmem_budget_bytes - fixed, 0)
    # f32 bytes per slab row: x + out blocks (double-buffered), mask block
    # (double-buffered), h_r/h_i scratch, and live temps (FF GELU slab dominates)
    per_row = 4 * (4 * D + 2 * H + 2 * H + FF + 2 * D + H)
    candidates = [bt for bt in range(1, max_bt + 1)
                  if B % bt == 0 and ((bt * L) % 8 == 0 or bt == B)]
    if not candidates:                                  # sublane-alignment fallback
        candidates = [bt for bt in range(1, B + 1)
                      if B % bt == 0 and ((bt * L) % 8 == 0 or bt == B)]
    best = candidates[0]
    for bt in candidates:
        if bt * L * per_row > avail:
            break
        best = bt
        if bt * L >= target_rows:
            break
    return best


def lru_block(x, mask, params, *, batch_tile=None):
    """x: (B, L, D) f32, mask: (B, L) 0/1.  Returns (B, L, D) f32."""
    B, L, D = x.shape
    assert L >= 1 and (L & (L - 1)) == 0, "sequence length must be a power of two"
    H = params["win"].shape[1]
    FF = params["w1"].shape[1]
    log2_L = L.bit_length() - 1
    vmem_limit = _vmem_limit_bytes()

    # fold batch into the matmul M dimension
    x2 = x.reshape(B * L, D).astype(jnp.float32)
    # lane-broadcast mask so in-kernel boundary gathers are plain row reads
    m2 = jnp.broadcast_to(mask.reshape(B * L, 1).astype(jnp.float32), (B * L, H))
    pw = _lamb_power_table(params["lamb_r"], params["lamb_i"], L)
    vecs = _pack_vectors(params, D, H, FF)

    Bt = batch_tile if batch_tile is not None else _pick_batch_tile(
        B, L, D, H, FF, vmem_budget_bytes=int(vmem_limit * 0.75))
    assert B % Bt == 0
    M = Bt * L
    grid = (B // Bt,)

    kernel = functools.partial(lru_block_kernel, log2_L=log2_L, seq_len=L,
                               block_loop_max=16)

    # TODO(synk): for very large D/FF (>=1024) add a K-reduction grid axis so
    # the FFN weights stream as tiles instead of residing whole in v7x's VMEM;
    # likewise pad D/H/FF to multiples of 128 if the model dims become tunable.
    def build(single_buffer_consts):
        if single_buffer_consts:
            const = lambda shape: pl.BlockSpec(shape, lambda b: (0, 0),
                                               pipeline_mode=pl.Buffered(1))
        else:
            const = lambda shape: pl.BlockSpec(shape, lambda b: (0, 0))
        return pl.pallas_call(
            kernel,
            out_shape=jax.ShapeDtypeStruct((B * L, D), jnp.float32),
            grid=grid,
            in_specs=[
                pl.BlockSpec((M, D), lambda b: (b, 0)),   # x rows
                pl.BlockSpec((M, H), lambda b: (b, 0)),   # mask rows (lane-bcast)
                const(pw.shape),                          # lamb powers (re|im)
                const(vecs.shape),                        # packed bias/LN vectors
                const((D, H)), const((H, D)),             # in_proj / out_proj
                const((D, FF)), const((FF, D)),           # FFN w1 / w2
            ],
            out_specs=pl.BlockSpec((M, D), lambda b: (b, 0)),
            scratch_shapes=[pltpu.VMEM((M, H), jnp.float32),   # h real
                            pltpu.VMEM((M, H), jnp.float32)],  # h imag
            compiler_params=pltpu.CompilerParams(
                dimension_semantics=("parallel",),
                vmem_limit_bytes=vmem_limit),
        )

    args = (x2, m2, pw, vecs,
            params["win"].astype(jnp.bfloat16), params["wout"].astype(jnp.bfloat16),
            params["w1"].astype(jnp.bfloat16), params["w2"].astype(jnp.bfloat16))
    try:
        out2 = build(True)(*args)
    except Exception:
        # this jax build rejects pipeline_mode=pl.Buffered(1); use defaults
        out2 = build(False)(*args)
    return out2.reshape(B, L, D)


# --------------------------------------------------------------------------
# Deterministic parameter setup (mirrors LRUBlock.__init__) + demo run
# --------------------------------------------------------------------------
def make_params(key, D):
    H, FF = 2 * D, 4 * D
    r_min, r_max = 0.8, 0.99
    ks = jax.random.split(key, 10)

    u1 = jax.random.uniform(ks[0], (H,), jnp.float32)
    u2 = jax.random.uniform(ks[1], (H,), jnp.float32)
    nu_log = jnp.log(-0.5 * jnp.log(u1 * (r_max ** 2 - r_min ** 2) + r_min ** 2))
    theta_log = jnp.log(u2 * 2.0 * jnp.pi)
    nu = jnp.exp(nu_log)
    theta = jnp.exp(theta_log)
    gamma = jnp.sqrt(1.0 - jnp.exp(-2.0 * nu))        # exp(gamma_log)
    lamb_r = jnp.exp(-nu) * jnp.cos(theta)            # Re/Im of exp(-nu + i*theta)
    lamb_i = jnp.exp(-nu) * jnp.sin(theta)

    def lin(k, fan_in, shape):
        b = 1.0 / math.sqrt(fan_in)
        return jax.random.uniform(k, shape, jnp.float32, -b, b)

    return dict(
        win=lin(ks[2], D, (D, H)), bin=lin(ks[3], D, (1, H)),
        gamma=gamma.reshape(1, H),
        lamb_r=lamb_r, lamb_i=lamb_i,
        wout=lin(ks[4], H, (H, D)), bout=lin(ks[5], H, (1, D)),
        ln1_g=jnp.ones((1, D), jnp.float32), ln1_b=jnp.zeros((1, D), jnp.float32),
        w1=lin(ks[6], D, (D, FF)), b1=lin(ks[7], D, (1, FF)),
        w2=lin(ks[8], FF, (FF, D)), b2=lin(ks[9], FF, (1, D)),
        ln2_g=jnp.ones((1, D), jnp.float32), ln2_b=jnp.zeros((1, D), jnp.float32),
    )


if __name__ == "__main__":
    B, L, D = 2, 8, 32        # bert_hidden_units = 32; L must be a power of 2
    key = jax.random.PRNGKey(0)
    kx, kp = jax.random.split(key)

    x = jax.random.normal(kx, (B, L, D), jnp.float32)
    lens = jnp.array([L, L - 2], jnp.int32)            # padding mask: lens 8 and 6
    mask = (jnp.arange(L)[None, :] < lens[:, None]).astype(jnp.float32)   # (B, L)

    params = make_params(kp, D)

    out = lru_block(x, mask, params)
    jax.block_until_ready(out)
    assert out.shape == (B, L, D)
    print("KERNEL_OK")
</pallas_src>

<mosaic_0001>
module attributes {stable_mosaic.version = 11 : i64} {
  func.func @lru_block_kernel(%arg0: i32, %arg1: memref<8x32xf32, #tpu.memory_space<vmem>>, %arg2: memref<8x64xf32, #tpu.memory_space<vmem>>, %arg3: memref<8x64xf32, #tpu.memory_space<vmem>>, %arg4: memref<9x128xf32, #tpu.memory_space<vmem>>, %arg5: memref<32x64xbf16, #tpu.memory_space<vmem>>, %arg6: memref<64x32xbf16, #tpu.memory_space<vmem>>, %arg7: memref<32x128xbf16, #tpu.memory_space<vmem>>, %arg8: memref<128x32xbf16, #tpu.memory_space<vmem>>, %arg9: memref<8x32xf32, #tpu.memory_space<vmem>>, %arg10: memref<8x64xf32, #tpu.memory_space<vmem>>, %arg11: memref<8x64xf32, #tpu.memory_space<vmem>>) attributes {dimension_semantics = [#tpu.dimension_semantics<parallel>], iteration_bounds = array<i64: 2>, scalar_prefetch = 0 : i64, scratch_operands = 2 : i64, tpu.core_type = #tpu.core_type<tc>, window_params = [{transform_indices = @transform_0, window_bounds = array<i64: 8, 32>}, {transform_indices = @transform_1, window_bounds = array<i64: 8, 64>}, {pipeline_mode = #tpu.pipeline_mode<synchronous>, transform_indices = @transform_2, window_bounds = array<i64: 8, 64>}, {pipeline_mode = #tpu.pipeline_mode<synchronous>, transform_indices = @transform_3, window_bounds = array<i64: 9, 128>}, {pipeline_mode = #tpu.pipeline_mode<synchronous>, transform_indices = @transform_4, window_bounds = array<i64: 32, 64>}, {pipeline_mode = #tpu.pipeline_mode<synchronous>, transform_indices = @transform_5, window_bounds = array<i64: 64, 32>}, {pipeline_mode = #tpu.pipeline_mode<synchronous>, transform_indices = @transform_6, window_bounds = array<i64: 32, 128>}, {pipeline_mode = #tpu.pipeline_mode<synchronous>, transform_indices = @transform_7, window_bounds = array<i64: 128, 32>}, {transform_indices = @transform_8, window_bounds = array<i64: 8, 32>}]} {
    %c0 = arith.constant 0 : index
    %c0_0 = arith.constant 0 : index
    %0 = vector.load %arg4[%c0, %c0_0] : memref<9x128xf32, #tpu.memory_space<vmem>>, vector<1x64xf32>
    %c1 = arith.constant 1 : index
    %c0_1 = arith.constant 0 : index
    %1 = vector.load %arg4[%c1, %c0_1] : memref<9x128xf32, #tpu.memory_space<vmem>>, vector<1x64xf32>
    %c2 = arith.constant 2 : index
    %c0_2 = arith.constant 0 : index
    %2 = vector.load %arg4[%c2, %c0_2] : memref<9x128xf32, #tpu.memory_space<vmem>>, vector<1x32xf32>
    %c3 = arith.constant 3 : index
    %c0_3 = arith.constant 0 : index
    %3 = vector.load %arg4[%c3, %c0_3] : memref<9x128xf32, #tpu.memory_space<vmem>>, vector<1x32xf32>
    %c4 = arith.constant 4 : index
    %c0_4 = arith.constant 0 : index
    %4 = vector.load %arg4[%c4, %c0_4] : memref<9x128xf32, #tpu.memory_space<vmem>>, vector<1x32xf32>
    %c5 = arith.constant 5 : index
    %c0_5 = arith.constant 0 : index
    %5 = vector.load %arg4[%c5, %c0_5] : memref<9x128xf32, #tpu.memory_space<vmem>>, vector<1x128xf32>
    %c6 = arith.constant 6 : index
    %c0_6 = arith.constant 0 : index
    %6 = vector.load %arg4[%c6, %c0_6] : memref<9x128xf32, #tpu.memory_space<vmem>>, vector<1x32xf32>
    %c7 = arith.constant 7 : index
    %c0_7 = arith.constant 0 : index
    %7 = vector.load %arg4[%c7, %c0_7] : memref<9x128xf32, #tpu.memory_space<vmem>>, vector<1x32xf32>
    %c8 = arith.constant 8 : index
    %c0_8 = arith.constant 0 : index
    %8 = vector.load %arg4[%c8, %c0_8] : memref<9x128xf32, #tpu.memory_space<vmem>>, vector<1x32xf32>
    %c0_9 = arith.constant 0 : index
    %c0_10 = arith.constant 0 : index
    %9 = vector.load %arg1[%c0_9, %c0_10] : memref<8x32xf32, #tpu.memory_space<vmem>>, vector<8x32xf32>
    %10 = arith.truncf %9 : vector<8x32xf32> to vector<8x32xbf16>
    %c0_11 = arith.constant 0 : index
    %c0_12 = arith.constant 0 : index
    %11 = vector.load %arg5[%c0_11, %c0_12] : memref<32x64xbf16, #tpu.memory_space<vmem>>, vector<32x64xbf16>
    %cst = arith.constant dense<0.000000e+00> : vector<8x64xf32>
    %12 = tpu.matmul %10, %11, %cst {dimension_numbers = #tpu.dot_dimension_numbers<[1], [0], [0], [1], [0, 0, 1, 1], [], []>} : vector<8x32xbf16>, vector<32x64xbf16>, vector<8x64xf32> -> vector<8x64xf32>
    %13 = vector.broadcast %0 : vector<1x64xf32> to vector<8x64xf32>
    %14 = arith.addf %12, %13 : vector<8x64xf32>
    %15 = vector.broadcast %1 : vector<1x64xf32> to vector<8x64xf32>
    %16 = arith.mulf %14, %15 : vector<8x64xf32>
    %c0_13 = arith.constant 0 : index
    %c0_14 = arith.constant 0 : index
    %17 = vector.load %arg10[%c0_13, %c0_14] : memref<8x64xf32, #tpu.memory_space<vmem>>, vector<8x64xf32>
    tpu.vector_store %arg10[%c0_13, %c0_14], %16 {strides = array<i32>} : memref<8x64xf32, #tpu.memory_space<vmem>>, vector<8x64xf32>,
    %cst_15 = arith.constant 0.000000e+00 : f32
    %18 = vector.broadcast %cst_15 : f32 to vector<8x64xf32>
    %c0_16 = arith.constant 0 : index
    %c0_17 = arith.constant 0 : index
    %19 = vector.load %arg11[%c0_16, %c0_17] : memref<8x64xf32, #tpu.memory_space<vmem>>, vector<8x64xf32>
    tpu.vector_store %arg11[%c0_16, %c0_17], %18 {strides = array<i32>} : memref<8x64xf32, #tpu.memory_space<vmem>>, vector<8x64xf32>,
    %c0_18 = arith.constant 0 : index
    %c0_19 = arith.constant 0 : index
    %20 = vector.load %arg3[%c0_18, %c0_19] : memref<8x64xf32, #tpu.memory_space<vmem>>, vector<1x64xf32>
    %c4_20 = arith.constant 4 : index
    %c0_21 = arith.constant 0 : index
    %21 = vector.load %arg3[%c4_20, %c0_21] : memref<8x64xf32, #tpu.memory_space<vmem>>, vector<1x64xf32>
    %c0_22 = arith.constant 0 : index
    %c0_23 = arith.constant 0 : index
    %22 = vector.load %arg2[%c0_22, %c0_23] : memref<8x64xf32, #tpu.memory_space<vmem>>, vector<1x64xf32>
    %c0_24 = arith.constant 0 : index
    %c0_25 = arith.constant 0 : index
    %23 = vector.load %arg10[%c0_24, %c0_25] : memref<8x64xf32, #tpu.memory_space<vmem>>, vector<1x64xf32>
    %24 = arith.mulf %23, %22 : vector<1x64xf32>
    %25 = arith.mulf %20, %24 : vector<1x64xf32>
    %26 = arith.mulf %21, %24 : vector<1x64xf32>
    %c1_26 = arith.constant 1 : index
    %c0_27 = arith.constant 0 : index
    %27 = vector.load %arg10[%c1_26, %c0_27] : memref<8x64xf32, #tpu.memory_space<vmem>>, vector<1x64xf32>
    %28 = arith.addf %27, %25 : vector<1x64xf32>
    %c1_28 = arith.constant 1 : index
    %c0_29 = arith.constant 0 : index
    %29 = vector.load %arg10[%c1_28, %c0_29] : memref<8x64xf32, #tpu.memory_space<vmem>>, vector<1x64xf32>
    tpu.vector_store %arg10[%c1_28, %c0_29], %28 {strides = array<i32>} : memref<8x64xf32, #tpu.memory_space<vmem>>, vector<1x64xf32>,
    %c1_30 = arith.constant 1 : index
    %c0_31 = arith.constant 0 : index
    %30 = vector.load %arg11[%c1_30, %c0_31] : memref<8x64xf32, #tpu.memory_space<vmem>>, vector<1x64xf32>
    %31 = arith.addf %30, %26 : vector<1x64xf32>
    %c1_32 = arith.constant 1 : index
    %c0_33 = arith.constant 0 : index
    %32 = vector.load %arg11[%c1_32, %c0_33] : memref<8x64xf32, #tpu.memory_space<vmem>>, vector<1x64xf32>
    tpu.vector_store %arg11[%c1_32, %c0_33], %31 {strides = array<i32>} : memref<8x64xf32, #tpu.memory_space<vmem>>, vector<1x64xf32>,
    %c2_34 = arith.constant 2 : index
    %c0_35 = arith.constant 0 : index
    %33 = vector.load %arg2[%c2_34, %c0_35] : memref<8x64xf32, #tpu.memory_space<vmem>>, vector<1x64xf32>
    %c2_36 = arith.constant 2 : index
    %c0_37 = arith.constant 0 : index
    %34 = vector.load %arg10[%c2_36, %c0_37] : memref<8x64xf32, #tpu.memory_space<vmem>>, vector<1x64xf32>
    %35 = arith.mulf %34, %33 : vector<1x64xf32>
    %36 = arith.mulf %20, %35 : vector<1x64xf32>
    %37 = arith.mulf %21, %35 : vector<1x64xf32>
    %c3_38 = arith.constant 3 : index
    %c0_39 = arith.constant 0 : index
    %38 = vector.load %arg10[%c3_38, %c0_39] : memref<8x64xf32, #tpu.memory_space<vmem>>, vector<1x64xf32>
    %39 = arith.addf %38, %36 : vector<1x64xf32>
    %c3_40 = arith.constant 3 : index
    %c0_41 = arith.constant 0 : index
    %40 = vector.load %arg10[%c3_40, %c0_41] : memref<8x64xf32, #tpu.memory_space<vmem>>, vector<1x64xf32>
    tpu.vector_store %arg10[%c3_40, %c0_41], %39 {strides = array<i32>} : memref<8x64xf32, #tpu.memory_space<vmem>>, vector<1x64xf32>,
    %c3_42 = arith.constant 3 : index
    %c0_43 = arith.constant 0 : index
    %41 = vector.load %arg11[%c3_42, %c0_43] : memref<8x64xf32, #tpu.memory_space<vmem>>, vector<1x64xf32>
    %42 = arith.addf %41, %37 : vector<1x64xf32>
    %c3_44 = arith.constant 3 : index
    %c0_45 = arith.constant 0 : index
    %43 = vector.load %arg11[%c3_44, %c0_45] : memref<8x64xf32, #tpu.memory_space<vmem>>, vector<1x64xf32>
    tpu.vector_store %arg11[%c3_44, %c0_45], %42 {strides = array<i32>} : memref<8x64xf32, #tpu.memory_space<vmem>>, vector<1x64xf32>,
    %c4_46 = arith.constant 4 : index
    %c0_47 = arith.constant 0 : index
    %44 = vector.load %arg2[%c4_46, %c0_47] : memref<8x64xf32, #tpu.memory_space<vmem>>, vector<1x64xf32>
    %c4_48 = arith.constant 4 : index
    %c0_49 = arith.constant 0 : index
    %45 = vector.load %arg10[%c4_48, %c0_49] : memref<8x64xf32, #tpu.memory_space<vmem>>, vector<1x64xf32>
    %46 = arith.mulf %45, %44 : vector<1x64xf32>
    %47 = arith.mulf %20, %46 : vector<1x64xf32>
    %48 = arith.mulf %21, %46 : vector<1x64xf32>
    %c5_50 = arith.constant 5 : index
    %c0_51 = arith.constant 0 : index
    %49 = vector.load %arg10[%c5_50, %c0_51] : memref<8x64xf32, #tpu.memory_space<vmem>>, vector<1x64xf32>
    %50 = arith.addf %49, %47 : vector<1x64xf32>
    %c5_52 = arith.constant 5 : index
    %c0_53 = arith.constant 0 : index
    %51 = vector.load %arg10[%c5_52, %c0_53] : memref<8x64xf32, #tpu.memory_space<vmem>>, vector<1x64xf32>
    tpu.vector_store %arg10[%c5_52, %c0_53], %50 {strides = array<i32>} : memref<8x64xf32, #tpu.memory_space<vmem>>, vector<1x64xf32>,
    %c5_54 = arith.constant 5 : index
    %c0_55 = arith.constant 0 : index
    %52 = vector.load %arg11[%c5_54, %c0_55] : memref<8x64xf32, #tpu.memory_space<vmem>>, vector<1x64xf32>
    %53 = arith.addf %52, %48 : vector<1x64xf32>
    %c5_56 = arith.constant 5 : index
    %c0_57 = arith.constant 0 : index
    %54 = vector.load %arg11[%c5_56, %c0_57] : memref<8x64xf32, #tpu.memory_space<vmem>>, vector<1x64xf32>
    tpu.vector_store %arg11[%c5_56, %c0_57], %53 {strides = array<i32>} : memref<8x64xf32, #tpu.memory_space<vmem>>, vector<1x64xf32>,
    %c6_58 = arith.constant 6 : index
    %c0_59 = arith.constant 0 : index
    %55 = vector.load %arg2[%c6_58, %c0_59] : memref<8x64xf32, #tpu.memory_space<vmem>>, vector<1x64xf32>
    %c6_60 = arith.constant 6 : index
    %c0_61 = arith.constant 0 : index
    %56 = vector.load %arg10[%c6_60, %c0_61] : memref<8x64xf32, #tpu.memory_space<vmem>>, vector<1x64xf32>
    %57 = arith.mulf %56, %55 : vector<1x64xf32>
    %58 = arith.mulf %20, %57 : vector<1x64xf32>
    %59 = arith.mulf %21, %57 : vector<1x64xf32>
    %c7_62 = arith.constant 7 : index
    %c0_63 = arith.constant 0 : index
    %60 = vector.load %arg10[%c7_62, %c0_63] : memref<8x64xf32, #tpu.memory_space<vmem>>, vector<1x64xf32>
    %61 = arith.addf %60, %58 : vector<1x64xf32>
    %c7_64 = arith.constant 7 : index
    %c0_65 = arith.constant 0 : index
    %62 = vector.load %arg10[%c7_64, %c0_65] : memref<8x64xf32, #tpu.memory_space<vmem>>, vector<1x64xf32>
    tpu.vector_store %arg10[%c7_64, %c0_65], %61 {strides = array<i32>} : memref<8x64xf32, #tpu.memory_space<vmem>>, vector<1x64xf32>,
    %c7_66 = arith.constant 7 : index
    %c0_67 = arith.constant 0 : index
    %63 = vector.load %arg11[%c7_66, %c0_67] : memref<8x64xf32, #tpu.memory_space<vmem>>, vector<1x64xf32>
    %64 = arith.addf %63, %59 : vector<1x64xf32>
    %c7_68 = arith.constant 7 : index
    %c0_69 = arith.constant 0 : index
    %65 = vector.load %arg11[%c7_68, %c0_69] : memref<8x64xf32, #tpu.memory_space<vmem>>, vector<1x64xf32>
    tpu.vector_store %arg11[%c7_68, %c0_69], %64 {strides = array<i32>} : memref<8x64xf32, #tpu.memory_space<vmem>>, vector<1x64xf32>,
    %c0_70 = arith.constant 0 : index
    %c0_71 = arith.constant 0 : index
    %66 = vector.load %arg3[%c0_70, %c0_71] : memref<8x64xf32, #tpu.memory_space<vmem>>, vector<2x64xf32>
    %c4_72 = arith.constant 4 : index
    %c0_73 = arith.constant 0 : index
    %67 = vector.load %arg3[%c4_72, %c0_73] : memref<8x64xf32, #tpu.memory_space<vmem>>, vector<2x64xf32>
    %c1_74 = arith.constant 1 : index
    %c0_75 = arith.constant 0 : index
    %68 = vector.load %arg2[%c1_74, %c0_75] : memref<8x64xf32, #tpu.memory_space<vmem>>, vector<1x64xf32>
    %c1_76 = arith.constant 1 : index
    %c0_77 = arith.constant 0 : index
    %69 = vector.load %arg10[%c1_76, %c0_77] : memref<8x64xf32, #tpu.memory_space<vmem>>, vector<1x64xf32>
    %70 = arith.mulf %69, %68 : vector<1x64xf32>
    %c1_78 = arith.constant 1 : index
    %c0_79 = arith.constant 0 : index
    %71 = vector.load %arg11[%c1_78, %c0_79] : memref<8x64xf32, #tpu.memory_space<vmem>>, vector<1x64xf32>
    %72 = arith.mulf %71, %68 : vector<1x64xf32>
    %73 = vector.broadcast %70 : vector<1x64xf32> to vector<2x64xf32>
    %74 = arith.mulf %66, %73 : vector<2x64xf32>
    %75 = vector.broadcast %72 : vector<1x64xf32> to vector<2x64xf32>
    %76 = arith.mulf %67, %75 : vector<2x64xf32>
    %77 = arith.subf %74, %76 : vector<2x64xf32>
    %78 = vector.broadcast %70 : vector<1x64xf32> to vector<2x64xf32>
    %79 = arith.mulf %67, %78 : vector<2x64xf32>
    %80 = vector.broadcast %72 : vector<1x64xf32> to vector<2x64xf32>
    %81 = arith.mulf %66, %80 : vector<2x64xf32>
    %82 = arith.addf %79, %81 : vector<2x64xf32>
    %c2_80 = arith.constant 2 : index
    %c0_81 = arith.constant 0 : index
    %83 = vector.load %arg10[%c2_80, %c0_81] : memref<8x64xf32, #tpu.memory_space<vmem>>, vector<2x64xf32>
    %84 = arith.addf %83, %77 : vector<2x64xf32>
    %c2_82 = arith.constant 2 : index
    %c0_83 = arith.constant 0 : index
    %85 = vector.load %arg10[%c2_82, %c0_83] : memref<8x64xf32, #tpu.memory_space<vmem>>, vector<2x64xf32>
    tpu.vector_store %arg10[%c2_82, %c0_83], %84 {strides = array<i32>} : memref<8x64xf32, #tpu.memory_space<vmem>>, vector<2x64xf32>,
    %c2_84 = arith.constant 2 : index
    %c0_85 = arith.constant 0 : index
    %86 = vector.load %arg11[%c2_84, %c0_85] : memref<8x64xf32, #tpu.memory_space<vmem>>, vector<2x64xf32>
    %87 = arith.addf %86, %82 : vector<2x64xf32>
    %c2_86 = arith.constant 2 : index
    %c0_87 = arith.constant 0 : index
    %88 = vector.load %arg11[%c2_86, %c0_87] : memref<8x64xf32, #tpu.memory_space<vmem>>, vector<2x64xf32>
    tpu.vector_store %arg11[%c2_86, %c0_87], %87 {strides = array<i32>} : memref<8x64xf32, #tpu.memory_space<vmem>>, vector<2x64xf32>,
    %c5_88 = arith.constant 5 : index
    %c0_89 = arith.constant 0 : index
    %89 = vector.load %arg2[%c5_88, %c0_89] : memref<8x64xf32, #tpu.memory_space<vmem>>, vector<1x64xf32>
    %c5_90 = arith.constant 5 : index
    %c0_91 = arith.constant 0 : index
    %90 = vector.load %arg10[%c5_90, %c0_91] : memref<8x64xf32, #tpu.memory_space<vmem>>, vector<1x64xf32>
    %91 = arith.mulf %90, %89 : vector<1x64xf32>
    %c5_92 = arith.constant 5 : index
    %c0_93 = arith.constant 0 : index
    %92 = vector.load %arg11[%c5_92, %c0_93] : memref<8x64xf32, #tpu.memory_space<vmem>>, vector<1x64xf32>
    %93 = arith.mulf %92, %89 : vector<1x64xf32>
    %94 = vector.broadcast %91 : vector<1x64xf32> to vector<2x64xf32>
    %95 = arith.mulf %66, %94 : vector<2x64xf32>
    %96 = vector.broadcast %93 : vector<1x64xf32> to vector<2x64xf32>
    %97 = arith.mulf %67, %96 : vector<2x64xf32>
    %98 = arith.subf %95, %97 : vector<2x64xf32>
    %99 = vector.broadcast %91 : vector<1x64xf32> to vector<2x64xf32>
    %100 = arith.mulf %67, %99 : vector<2x64xf32>
    %101 = vector.broadcast %93 : vector<1x64xf32> to vector<2x64xf32>
    %102 = arith.mulf %66, %101 : vector<2x64xf32>
    %103 = arith.addf %100, %102 : vector<2x64xf32>
    %c6_94 = arith.constant 6 : index
    %c0_95 = arith.constant 0 : index
    %104 = vector.load %arg10[%c6_94, %c0_95] : memref<8x64xf32, #tpu.memory_space<vmem>>, vector<2x64xf32>
    %105 = arith.addf %104, %98 : vector<2x64xf32>
    %c6_96 = arith.constant 6 : index
    %c0_97 = arith.constant 0 : index
    %106 = vector.load %arg10[%c6_96, %c0_97] : memref<8x64xf32, #tpu.memory_space<vmem>>, vector<2x64xf32>
    tpu.vector_store %arg10[%c6_96, %c0_97], %105 {strides = array<i32>} : memref<8x64xf32, #tpu.memory_space<vmem>>, vector<2x64xf32>,
    %c6_98 = arith.constant 6 : index
    %c0_99 = arith.constant 0 : index
    %107 = vector.load %arg11[%c6_98, %c0_99] : memref<8x64xf32, #tpu.memory_space<vmem>>, vector<2x64xf32>
    %108 = arith.addf %107, %103 : vector<2x64xf32>
    %c6_100 = arith.constant 6 : index
    %c0_101 = arith.constant 0 : index
    %109 = vector.load %arg11[%c6_100, %c0_101] : memref<8x64xf32, #tpu.memory_space<vmem>>, vector<2x64xf32>
    tpu.vector_store %arg11[%c6_100, %c0_101], %108 {strides = array<i32>} : memref<8x64xf32, #tpu.memory_space<vmem>>, vector<2x64xf32>,
    %c0_102 = arith.constant 0 : index
    %c0_103 = arith.constant 0 : index
    %110 = vector.load %arg3[%c0_102, %c0_103] : memref<8x64xf32, #tpu.memory_space<vmem>>, vector<4x64xf32>
    %c4_104 = arith.constant 4 : index
    %c0_105 = arith.constant 0 : index
    %111 = vector.load %arg3[%c4_104, %c0_105] : memref<8x64xf32, #tpu.memory_space<vmem>>, vector<4x64xf32>
    %c3_106 = arith.constant 3 : index
    %c0_107 = arith.constant 0 : index
    %112 = vector.load %arg2[%c3_106, %c0_107] : memref<8x64xf32, #tpu.memory_space<vmem>>, vector<1x64xf32>
    %c3_108 = arith.constant 3 : index
    %c0_109 = arith.constant 0 : index
    %113 = vector.load %arg10[%c3_108, %c0_109] : memref<8x64xf32, #tpu.memory_space<vmem>>, vector<1x64xf32>
    %114 = arith.mulf %113, %112 : vector<1x64xf32>
    %c3_110 = arith.constant 3 : index
    %c0_111 = arith.constant 0 : index
    %115 = vector.load %arg11[%c3_110, %c0_111] : memref<8x64xf32, #tpu.memory_space<vmem>>, vector<1x64xf32>
    %116 = arith.mulf %115, %112 : vector<1x64xf32>
    %117 = vector.broadcast %114 : vector<1x64xf32> to vector<4x64xf32>
    %118 = arith.mulf %110, %117 : vector<4x64xf32>
    %119 = vector.broadcast %116 : vector<1x64xf32> to vector<4x64xf32>
    %120 = arith.mulf %111, %119 : vector<4x64xf32>
    %121 = arith.subf %118, %120 : vector<4x64xf32>
    %c4_112 = arith.constant 4 : index
    %c0_113 = arith.constant 0 : index
    %122 = vector.load %arg10[%c4_112, %c0_113] : memref<8x64xf32, #tpu.memory_space<vmem>>, vector<4x64xf32>
    %123 = arith.addf %122, %121 : vector<4x64xf32>
    %c4_114 = arith.constant 4 : index
    %c0_115 = arith.constant 0 : index
    %124 = vector.load %arg10[%c4_114, %c0_115] : memref<8x64xf32, #tpu.memory_space<vmem>>, vector<4x64xf32>
    tpu.vector_store %arg10[%c4_114, %c0_115], %123 {strides = array<i32>} : memref<8x64xf32, #tpu.memory_space<vmem>>, vector<4x64xf32>,
    %c0_116 = arith.constant 0 : index
    %c0_117 = arith.constant 0 : index
    %125 = vector.load %arg10[%c0_116, %c0_117] : memref<8x64xf32, #tpu.memory_space<vmem>>, vector<8x64xf32>
    %126 = arith.truncf %125 : vector<8x64xf32> to vector<8x64xbf16>
    %c0_118 = arith.constant 0 : index
    %c0_119 = arith.constant 0 : index
    %127 = vector.load %arg6[%c0_118, %c0_119] : memref<64x32xbf16, #tpu.memory_space<vmem>>, vector<64x32xbf16>
    %cst_120 = arith.constant dense<0.000000e+00> : vector<8x32xf32>
    %128 = tpu.matmul %126, %127, %cst_120 {dimension_numbers = #tpu.dot_dimension_numbers<[1], [0], [0], [1], [0, 0, 1, 1], [], []>} : vector<8x64xbf16>, vector<64x32xbf16>, vector<8x32xf32> -> vector<8x32xf32>
    %129 = vector.broadcast %2 : vector<1x32xf32> to vector<8x32xf32>
    %130 = arith.addf %128, %129 : vector<8x32xf32>
    %131 = arith.addf %130, %9 : vector<8x32xf32>
    %cst_121 = arith.constant dense<0.000000e+00> : vector<8xf32>
    %132 = vector.multi_reduction <add>, %131, %cst_121 [1] : vector<8x32xf32> to vector<8xf32>
    %133 = vector.shape_cast %132 : vector<8xf32> to vector<8x1xf32>
    %cst_122 = arith.constant 3.200000e+01 : f32
    %134 = vector.broadcast %cst_122 : f32 to vector<8x1xf32>
    %135 = arith.divf %133, %134 : vector<8x1xf32>
    %136 = vector.broadcast %135 : vector<8x1xf32> to vector<8x32xf32>
    %137 = arith.subf %131, %136 : vector<8x32xf32>
    %138 = arith.mulf %137, %137 : vector<8x32xf32>
    %cst_123 = arith.constant dense<0.000000e+00> : vector<8xf32>
    %139 = vector.multi_reduction <add>, %138, %cst_123 [1] : vector<8x32xf32> to vector<8xf32>
    %140 = vector.shape_cast %139 : vector<8xf32> to vector<8x1xf32>
    %cst_124 = arith.constant 3.200000e+01 : f32
    %141 = vector.broadcast %cst_124 : f32 to vector<8x1xf32>
    %142 = arith.divf %140, %141 : vector<8x1xf32>
    %143 = vector.broadcast %135 : vector<8x1xf32> to vector<8x32xf32>
    %144 = arith.subf %131, %143 : vector<8x32xf32>
    %cst_125 = arith.constant 9.99999974E-6 : f32
    %145 = vector.broadcast %cst_125 : f32 to vector<8x1xf32>
    %146 = arith.addf %142, %145 : vector<8x1xf32>
    %147 = math.rsqrt %146 : vector<8x1xf32>
    %148 = vector.broadcast %147 : vector<8x1xf32> to vector<8x32xf32>
    %149 = arith.mulf %144, %148 : vector<8x32xf32>
    %150 = vector.broadcast %3 : vector<1x32xf32> to vector<8x32xf32>
    %151 = arith.mulf %149, %150 : vector<8x32xf32>
    %152 = vector.broadcast %4 : vector<1x32xf32> to vector<8x32xf32>
    %153 = arith.addf %151, %152 : vector<8x32xf32>
    %154 = arith.truncf %153 : vector<8x32xf32> to vector<8x32xbf16>
    %c0_126 = arith.constant 0 : index
    %c0_127 = arith.constant 0 : index
    %155 = vector.load %arg7[%c0_126, %c0_127] : memref<32x128xbf16, #tpu.memory_space<vmem>>, vector<32x128xbf16>
    %cst_128 = arith.constant dense<0.000000e+00> : vector<8x128xf32>
    %156 = tpu.matmul %154, %155, %cst_128 {dimension_numbers = #tpu.dot_dimension_numbers<[1], [0], [0], [1], [0, 0, 1, 1], [], []>} : vector<8x32xbf16>, vector<32x128xbf16>, vector<8x128xf32> -> vector<8x128xf32>
    %157 = vector.broadcast %5 : vector<1x128xf32> to vector<8x128xf32>
    %158 = arith.addf %156, %157 : vector<8x128xf32>
    %cst_129 = arith.constant 5.000000e-01 : f32
    %159 = vector.broadcast %cst_129 : f32 to vector<8x128xf32>
    %160 = arith.mulf %159, %158 : vector<8x128xf32>
    %cst_130 = arith.constant 0.707106769 : f32
    %161 = vector.broadcast %cst_130 : f32 to vector<8x128xf32>
    %162 = arith.mulf %158, %161 : vector<8x128xf32>
    %163 = math.erf %162 : vector<8x128xf32>
    %cst_131 = arith.constant 1.000000e+00 : f32
    %164 = vector.broadcast %cst_131 : f32 to vector<8x128xf32>
    %165 = arith.addf %164, %163 : vector<8x128xf32>
    %166 = arith.mulf %160, %165 : vector<8x128xf32>
    %167 = arith.truncf %166 : vector<8x128xf32> to vector<8x128xbf16>
    %c0_132 = arith.constant 0 : index
    %c0_133 = arith.constant 0 : index
    %168 = vector.load %arg8[%c0_132, %c0_133] : memref<128x32xbf16, #tpu.memory_space<vmem>>, vector<128x32xbf16>
    %cst_134 = arith.constant dense<0.000000e+00> : vector<8x32xf32>
    %169 = tpu.matmul %167, %168, %cst_134 {dimension_numbers = #tpu.dot_dimension_numbers<[1], [0], [0], [1], [0, 0, 1, 1], [], []>} : vector<8x128xbf16>, vector<128x32xbf16>, vector<8x32xf32> -> vector<8x32xf32>
    %170 = vector.broadcast %6 : vector<1x32xf32> to vector<8x32xf32>
    %171 = arith.addf %169, %170 : vector<8x32xf32>
    %172 = arith.addf %171, %153 : vector<8x32xf32>
    %cst_135 = arith.constant dense<0.000000e+00> : vector<8xf32>
    %173 = vector.multi_reduction <add>, %172, %cst_135 [1] : vector<8x32xf32> to vector<8xf32>
    %174 = vector.shape_cast %173 : vector<8xf32> to vector<8x1xf32>
    %cst_136 = arith.constant 3.200000e+01 : f32
    %175 = vector.broadcast %cst_136 : f32 to vector<8x1xf32>
    %176 = arith.divf %174, %175 : vector<8x1xf32>
    %177 = vector.broadcast %176 : vector<8x1xf32> to vector<8x32xf32>
    %178 = arith.subf %172, %177 : vector<8x32xf32>
    %179 = arith.mulf %178, %178 : vector<8x32xf32>
    %cst_137 = arith.constant dense<0.000000e+00> : vector<8xf32>
    %180 = vector.multi_reduction <add>, %179, %cst_137 [1] : vector<8x32xf32> to vector<8xf32>
    %181 = vector.shape_cast %180 : vector<8xf32> to vector<8x1xf32>
    %cst_138 = arith.constant 3.200000e+01 : f32
    %182 = vector.broadcast %cst_138 : f32 to vector<8x1xf32>
    %183 = arith.divf %181, %182 : vector<8x1xf32>
    %184 = vector.broadcast %176 : vector<8x1xf32> to vector<8x32xf32>
    %185 = arith.subf %172, %184 : vector<8x32xf32>
    %cst_139 = arith.constant 9.99999974E-6 : f32
    %186 = vector.broadcast %cst_139 : f32 to vector<8x1xf32>
    %187 = arith.addf %183, %186 : vector<8x1xf32>
    %188 = math.rsqrt %187 : vector<8x1xf32>
    %189 = vector.broadcast %188 : vector<8x1xf32> to vector<8x32xf32>
    %190 = arith.mulf %185, %189 : vector<8x32xf32>
    %191 = vector.broadcast %7 : vector<1x32xf32> to vector<8x32xf32>
    %192 = arith.mulf %190, %191 : vector<8x32xf32>
    %193 = vector.broadcast %8 : vector<1x32xf32> to vector<8x32xf32>
    %194 = arith.addf %192, %193 : vector<8x32xf32>
    %c0_140 = arith.constant 0 : index
    %c0_141 = arith.constant 0 : index
    %195 = vector.load %arg9[%c0_140, %c0_141] : memref<8x32xf32, #tpu.memory_space<vmem>>, vector<8x32xf32>
    tpu.vector_store %arg9[%c0_140, %c0_141], %194 {strides = array<i32>} : memref<8x32xf32, #tpu.memory_space<vmem>>, vector<8x32xf32>,
    return
  }
  func.func @transform_0(%arg0: i32) -> (i32, i32) {
    %c0_i32 = arith.constant 0 : i32
    %c0_i32_0 = arith.constant 0 : i32
    return %arg0, %c0_i32 : i32, i32
  }
  func.func @transform_1(%arg0: i32) -> (i32, i32) {
    %c0_i32 = arith.constant 0 : i32
    %c0_i32_0 = arith.constant 0 : i32
    return %arg0, %c0_i32 : i32, i32
  }
  func.func @transform_2(%arg0: i32) -> (i32, i32) {
    %c0_i32 = arith.constant 0 : i32
    %c0_i32_0 = arith.constant 0 : i32
    %c0_i32_1 = arith.constant 0 : i32
    return %c0_i32, %c0_i32_0 : i32, i32
  }
  func.func @transform_3(%arg0: i32) -> (i32, i32) {
    %c0_i32 = arith.constant 0 : i32
    %c0_i32_0 = arith.constant 0 : i32
    %c0_i32_1 = arith.constant 0 : i32
    return %c0_i32, %c0_i32_0 : i32, i32
  }
  func.func @transform_4(%arg0: i32) -> (i32, i32) {
    %c0_i32 = arith.constant 0 : i32
    %c0_i32_0 = arith.constant 0 : i32
    %c0_i32_1 = arith.constant 0 : i32
    return %c0_i32, %c0_i32_0 : i32, i32
  }
  func.func @transform_5(%arg0: i32) -> (i32, i32) {
    %c0_i32 = arith.constant 0 : i32
    %c0_i32_0 = arith.constant 0 : i32
    %c0_i32_1 = arith.constant 0 : i32
    return %c0_i32, %c0_i32_0 : i32, i32
  }
  func.func @transform_6(%arg0: i32) -> (i32, i32) {
    %c0_i32 = arith.constant 0 : i32
    %c0_i32_0 = arith.constant 0 : i32
    %c0_i32_1 = arith.constant 0 : i32
    return %c0_i32, %c0_i32_0 : i32, i32
  }
  func.func @transform_7(%arg0: i32) -> (i32, i32) {
    %c0_i32 = arith.constant 0 : i32
    %c0_i32_0 = arith.constant 0 : i32
    %c0_i32_1 = arith.constant 0 : i32
    return %c0_i32, %c0_i32_0 : i32, i32
  }
  func.func @transform_8(%arg0: i32) -> (i32, i32) {
    %c0_i32 = arith.constant 0 : i32
    %c0_i32_0 = arith.constant 0 : i32
    return %arg0, %c0_i32 : i32, i32
  }
}

module attributes {stable_mosaic.version = 11 : i64} {
  func.func @lru_block_kernel(%arg0: i32, %arg1: memref<8x32xf32, #tpu.memory_space<vmem>>, %arg2: memref<8x64xf32, #tpu.memory_space<vmem>>, %arg3: memref<8x64xf32, #tpu.memory_space<vmem>>, %arg4: memref<9x128xf32, #tpu.memory_space<vmem>>, %arg5: memref<32x64xbf16, #tpu.memory_space<vmem>>, %arg6: memref<64x32xbf16, #tpu.memory_space<vmem>>, %arg7: memref<32x128xbf16, #tpu.memory_space<vmem>>, %arg8: memref<128x32xbf16, #tpu.memory_space<vmem>>, %arg9: memref<8x32xf32, #tpu.memory_space<vmem>>, %arg10: memref<8x64xf32, #tpu.memory_space<vmem>>, %arg11: memref<8x64xf32, #tpu.memory_space<vmem>>) attributes {dimension_semantics = [#tpu.dimension_semantics<parallel>], iteration_bounds = array<i64: 2>, scalar_prefetch = 0 : i64, scratch_operands = 2 : i64, tpu.core_type = #tpu.core_type<tc>, window_params = [{transform_indices = @transform_0, window_bounds = array<i64: 8, 32>}, {transform_indices = @transform_1, window_bounds = array<i64: 8, 64>}, {pipeline_mode = #tpu.pipeline_mode<synchronous>, transform_indices = @transform_2, window_bounds = array<i64: 8, 64>}, {pipeline_mode = #tpu.pipeline_mode<synchronous>, transform_indices = @transform_3, window_bounds = array<i64: 9, 128>}, {pipeline_mode = #tpu.pipeline_mode<synchronous>, transform_indices = @transform_4, window_bounds = array<i64: 32, 64>}, {pipeline_mode = #tpu.pipeline_mode<synchronous>, transform_indices = @transform_5, window_bounds = array<i64: 64, 32>}, {pipeline_mode = #tpu.pipeline_mode<synchronous>, transform_indices = @transform_6, window_bounds = array<i64: 32, 128>}, {pipeline_mode = #tpu.pipeline_mode<synchronous>, transform_indices = @transform_7, window_bounds = array<i64: 128, 32>}, {transform_indices = @transform_8, window_bounds = array<i64: 8, 32>}]} {
    %c0 = arith.constant 0 : index
    %c0_0 = arith.constant 0 : index
    %0 = vector.load %arg4[%c0, %c0_0] : memref<9x128xf32, #tpu.memory_space<vmem>>, vector<1x64xf32>
    %c1 = arith.constant 1 : index
    %c0_1 = arith.constant 0 : index
    %1 = vector.load %arg4[%c1, %c0_1] : memref<9x128xf32, #tpu.memory_space<vmem>>, vector<1x64xf32>
    %c2 = arith.constant 2 : index
    %c0_2 = arith.constant 0 : index
    %2 = vector.load %arg4[%c2, %c0_2] : memref<9x128xf32, #tpu.memory_space<vmem>>, vector<1x32xf32>
    %c3 = arith.constant 3 : index
    %c0_3 = arith.constant 0 : index
    %3 = vector.load %arg4[%c3, %c0_3] : memref<9x128xf32, #tpu.memory_space<vmem>>, vector<1x32xf32>
    %c4 = arith.constant 4 : index
    %c0_4 = arith.constant 0 : index
    %4 = vector.load %arg4[%c4, %c0_4] : memref<9x128xf32, #tpu.memory_space<vmem>>, vector<1x32xf32>
    %c5 = arith.constant 5 : index
    %c0_5 = arith.constant 0 : index
    %5 = vector.load %arg4[%c5, %c0_5] : memref<9x128xf32, #tpu.memory_space<vmem>>, vector<1x128xf32>
    %c6 = arith.constant 6 : index
    %c0_6 = arith.constant 0 : index
    %6 = vector.load %arg4[%c6, %c0_6] : memref<9x128xf32, #tpu.memory_space<vmem>>, vector<1x32xf32>
    %c7 = arith.constant 7 : index
    %c0_7 = arith.constant 0 : index
    %7 = vector.load %arg4[%c7, %c0_7] : memref<9x128xf32, #tpu.memory_space<vmem>>, vector<1x32xf32>
    %c8 = arith.constant 8 : index
    %c0_8 = arith.constant 0 : index
    %8 = vector.load %arg4[%c8, %c0_8] : memref<9x128xf32, #tpu.memory_space<vmem>>, vector<1x32xf32>
    %c0_9 = arith.constant 0 : index
    %c0_10 = arith.constant 0 : index
    %9 = vector.load %arg1[%c0_9, %c0_10] : memref<8x32xf32, #tpu.memory_space<vmem>>, vector<8x32xf32>
    %10 = arith.truncf %9 : vector<8x32xf32> to vector<8x32xbf16>
    %c0_11 = arith.constant 0 : index
    %c0_12 = arith.constant 0 : index
    %11 = vector.load %arg5[%c0_11, %c0_12] : memref<32x64xbf16, #tpu.memory_space<vmem>>, vector<32x64xbf16>
    %cst = arith.constant dense<0.000000e+00> : vector<8x64xf32>
    %12 = tpu.matmul %10, %11, %cst {dimension_numbers = #tpu.dot_dimension_numbers<[1], [0], [0], [1], [0, 0, 1, 1], [], []>} : vector<8x32xbf16>, vector<32x64xbf16>, vector<8x64xf32> -> vector<8x64xf32>
    %13 = vector.broadcast %0 : vector<1x64xf32> to vector<8x64xf32>
    %14 = arith.addf %12, %13 : vector<8x64xf32>
    %15 = vector.broadcast %1 : vector<1x64xf32> to vector<8x64xf32>
    %16 = arith.mulf %14, %15 : vector<8x64xf32>
    %c0_13 = arith.constant 0 : index
    %c0_14 = arith.constant 0 : index
    %17 = vector.load %arg10[%c0_13, %c0_14] : memref<8x64xf32, #tpu.memory_space<vmem>>, vector<8x64xf32>
    tpu.vector_store %arg10[%c0_13, %c0_14], %16 {strides = array<i32>} : memref<8x64xf32, #tpu.memory_space<vmem>>, vector<8x64xf32>,
    %cst_15 = arith.constant 0.000000e+00 : f32
    %18 = vector.broadcast %cst_15 : f32 to vector<8x64xf32>
    %c0_16 = arith.constant 0 : index
    %c0_17 = arith.constant 0 : index
    %19 = vector.load %arg11[%c0_16, %c0_17] : memref<8x64xf32, #tpu.memory_space<vmem>>, vector<8x64xf32>
    tpu.vector_store %arg11[%c0_16, %c0_17], %18 {strides = array<i32>} : memref<8x64xf32, #tpu.memory_space<vmem>>, vector<8x64xf32>,
    %c0_18 = arith.constant 0 : index
    %c0_19 = arith.constant 0 : index
    %20 = vector.load %arg3[%c0_18, %c0_19] : memref<8x64xf32, #tpu.memory_space<vmem>>, vector<1x64xf32>
    %c4_20 = arith.constant 4 : index
    %c0_21 = arith.constant 0 : index
    %21 = vector.load %arg3[%c4_20, %c0_21] : memref<8x64xf32, #tpu.memory_space<vmem>>, vector<1x64xf32>
    %c0_22 = arith.constant 0 : index
    %c0_23 = arith.constant 0 : index
    %22 = vector.load %arg2[%c0_22, %c0_23] : memref<8x64xf32, #tpu.memory_space<vmem>>, vector<1x64xf32>
    %c0_24 = arith.constant 0 : index
    %c0_25 = arith.constant 0 : index
    %23 = vector.load %arg10[%c0_24, %c0_25] : memref<8x64xf32, #tpu.memory_space<vmem>>, vector<1x64xf32>
    %24 = arith.mulf %23, %22 : vector<1x64xf32>
    %25 = arith.mulf %20, %24 : vector<1x64xf32>
    %26 = arith.mulf %21, %24 : vector<1x64xf32>
    %c1_26 = arith.constant 1 : index
    %c0_27 = arith.constant 0 : index
    %27 = vector.load %arg10[%c1_26, %c0_27] : memref<8x64xf32, #tpu.memory_space<vmem>>, vector<1x64xf32>
    %28 = arith.addf %27, %25 : vector<1x64xf32>
    %c1_28 = arith.constant 1 : index
    %c0_29 = arith.constant 0 : index
    %29 = vector.load %arg10[%c1_28, %c0_29] : memref<8x64xf32, #tpu.memory_space<vmem>>, vector<1x64xf32>
    tpu.vector_store %arg10[%c1_28, %c0_29], %28 {strides = array<i32>} : memref<8x64xf32, #tpu.memory_space<vmem>>, vector<1x64xf32>,
    %c1_30 = arith.constant 1 : index
    %c0_31 = arith.constant 0 : index
    %30 = vector.load %arg11[%c1_30, %c0_31] : memref<8x64xf32, #tpu.memory_space<vmem>>, vector<1x64xf32>
    %31 = arith.addf %30, %26 : vector<1x64xf32>
    %c1_32 = arith.constant 1 : index
    %c0_33 = arith.constant 0 : index
    %32 = vector.load %arg11[%c1_32, %c0_33] : memref<8x64xf32, #tpu.memory_space<vmem>>, vector<1x64xf32>
    tpu.vector_store %arg11[%c1_32, %c0_33], %31 {strides = array<i32>} : memref<8x64xf32, #tpu.memory_space<vmem>>, vector<1x64xf32>,
    %c2_34 = arith.constant 2 : index
    %c0_35 = arith.constant 0 : index
    %33 = vector.load %arg2[%c2_34, %c0_35] : memref<8x64xf32, #tpu.memory_space<vmem>>, vector<1x64xf32>
    %c2_36 = arith.constant 2 : index
    %c0_37 = arith.constant 0 : index
    %34 = vector.load %arg10[%c2_36, %c0_37] : memref<8x64xf32, #tpu.memory_space<vmem>>, vector<1x64xf32>
    %35 = arith.mulf %34, %33 : vector<1x64xf32>
    %36 = arith.mulf %20, %35 : vector<1x64xf32>
    %37 = arith.mulf %21, %35 : vector<1x64xf32>
    %c3_38 = arith.constant 3 : index
    %c0_39 = arith.constant 0 : index
    %38 = vector.load %arg10[%c3_38, %c0_39] : memref<8x64xf32, #tpu.memory_space<vmem>>, vector<1x64xf32>
    %39 = arith.addf %38, %36 : vector<1x64xf32>
    %c3_40 = arith.constant 3 : index
    %c0_41 = arith.constant 0 : index
    %40 = vector.load %arg10[%c3_40, %c0_41] : memref<8x64xf32, #tpu.memory_space<vmem>>, vector<1x64xf32>
    tpu.vector_store %arg10[%c3_40, %c0_41], %39 {strides = array<i32>} : memref<8x64xf32, #tpu.memory_space<vmem>>, vector<1x64xf32>,
    %c3_42 = arith.constant 3 : index
    %c0_43 = arith.constant 0 : index
    %41 = vector.load %arg11[%c3_42, %c0_43] : memref<8x64xf32, #tpu.memory_space<vmem>>, vector<1x64xf32>
    %42 = arith.addf %41, %37 : vector<1x64xf32>
    %c3_44 = arith.constant 3 : index
    %c0_45 = arith.constant 0 : index
    %43 = vector.load %arg11[%c3_44, %c0_45] : memref<8x64xf32, #tpu.memory_space<vmem>>, vector<1x64xf32>
    tpu.vector_store %arg11[%c3_44, %c0_45], %42 {strides = array<i32>} : memref<8x64xf32, #tpu.memory_space<vmem>>, vector<1x64xf32>,
    %c4_46 = arith.constant 4 : index
    %c0_47 = arith.constant 0 : index
    %44 = vector.load %arg2[%c4_46, %c0_47] : memref<8x64xf32, #tpu.memory_space<vmem>>, vector<1x64xf32>
    %c4_48 = arith.constant 4 : index
    %c0_49 = arith.constant 0 : index
    %45 = vector.load %arg10[%c4_48, %c0_49] : memref<8x64xf32, #tpu.memory_space<vmem>>, vector<1x64xf32>
    %46 = arith.mulf %45, %44 : vector<1x64xf32>
    %47 = arith.mulf %20, %46 : vector<1x64xf32>
    %48 = arith.mulf %21, %46 : vector<1x64xf32>
    %c5_50 = arith.constant 5 : index
    %c0_51 = arith.constant 0 : index
    %49 = vector.load %arg10[%c5_50, %c0_51] : memref<8x64xf32, #tpu.memory_space<vmem>>, vector<1x64xf32>
    %50 = arith.addf %49, %47 : vector<1x64xf32>
    %c5_52 = arith.constant 5 : index
    %c0_53 = arith.constant 0 : index
    %51 = vector.load %arg10[%c5_52, %c0_53] : memref<8x64xf32, #tpu.memory_space<vmem>>, vector<1x64xf32>
    tpu.vector_store %arg10[%c5_52, %c0_53], %50 {strides = array<i32>} : memref<8x64xf32, #tpu.memory_space<vmem>>, vector<1x64xf32>,
    %c5_54 = arith.constant 5 : index
    %c0_55 = arith.constant 0 : index
    %52 = vector.load %arg11[%c5_54, %c0_55] : memref<8x64xf32, #tpu.memory_space<vmem>>, vector<1x64xf32>
    %53 = arith.addf %52, %48 : vector<1x64xf32>
    %c5_56 = arith.constant 5 : index
    %c0_57 = arith.constant 0 : index
    %54 = vector.load %arg11[%c5_56, %c0_57] : memref<8x64xf32, #tpu.memory_space<vmem>>, vector<1x64xf32>
    tpu.vector_store %arg11[%c5_56, %c0_57], %53 {strides = array<i32>} : memref<8x64xf32, #tpu.memory_space<vmem>>, vector<1x64xf32>,
    %c6_58 = arith.constant 6 : index
    %c0_59 = arith.constant 0 : index
    %55 = vector.load %arg2[%c6_58, %c0_59] : memref<8x64xf32, #tpu.memory_space<vmem>>, vector<1x64xf32>
    %c6_60 = arith.constant 6 : index
    %c0_61 = arith.constant 0 : index
    %56 = vector.load %arg10[%c6_60, %c0_61] : memref<8x64xf32, #tpu.memory_space<vmem>>, vector<1x64xf32>
    %57 = arith.mulf %56, %55 : vector<1x64xf32>
    %58 = arith.mulf %20, %57 : vector<1x64xf32>
    %59 = arith.mulf %21, %57 : vector<1x64xf32>
    %c7_62 = arith.constant 7 : index
    %c0_63 = arith.constant 0 : index
    %60 = vector.load %arg10[%c7_62, %c0_63] : memref<8x64xf32, #tpu.memory_space<vmem>>, vector<1x64xf32>
    %61 = arith.addf %60, %58 : vector<1x64xf32>
    %c7_64 = arith.constant 7 : index
    %c0_65 = arith.constant 0 : index
    %62 = vector.load %arg10[%c7_64, %c0_65] : memref<8x64xf32, #tpu.memory_space<vmem>>, vector<1x64xf32>
    tpu.vector_store %arg10[%c7_64, %c0_65], %61 {strides = array<i32>} : memref<8x64xf32, #tpu.memory_space<vmem>>, vector<1x64xf32>,
    %c7_66 = arith.constant 7 : index
    %c0_67 = arith.constant 0 : index
    %63 = vector.load %arg11[%c7_66, %c0_67] : memref<8x64xf32, #tpu.memory_space<vmem>>, vector<1x64xf32>
    %64 = arith.addf %63, %59 : vector<1x64xf32>
    %c7_68 = arith.constant 7 : index
    %c0_69 = arith.constant 0 : index
    %65 = vector.load %arg11[%c7_68, %c0_69] : memref<8x64xf32, #tpu.memory_space<vmem>>, vector<1x64xf32>
    tpu.vector_store %arg11[%c7_68, %c0_69], %64 {strides = array<i32>} : memref<8x64xf32, #tpu.memory_space<vmem>>, vector<1x64xf32>,
    %c0_70 = arith.constant 0 : index
    %c0_71 = arith.constant 0 : index
    %66 = vector.load %arg3[%c0_70, %c0_71] : memref<8x64xf32, #tpu.memory_space<vmem>>, vector<2x64xf32>
    %c4_72 = arith.constant 4 : index
    %c0_73 = arith.constant 0 : index
    %67 = vector.load %arg3[%c4_72, %c0_73] : memref<8x64xf32, #tpu.memory_space<vmem>>, vector<2x64xf32>
    %c1_74 = arith.constant 1 : index
    %c0_75 = arith.constant 0 : index
    %68 = vector.load %arg2[%c1_74, %c0_75] : memref<8x64xf32, #tpu.memory_space<vmem>>, vector<1x64xf32>
    %c1_76 = arith.constant 1 : index
    %c0_77 = arith.constant 0 : index
    %69 = vector.load %arg10[%c1_76, %c0_77] : memref<8x64xf32, #tpu.memory_space<vmem>>, vector<1x64xf32>
    %70 = arith.mulf %69, %68 : vector<1x64xf32>
    %c1_78 = arith.constant 1 : index
    %c0_79 = arith.constant 0 : index
    %71 = vector.load %arg11[%c1_78, %c0_79] : memref<8x64xf32, #tpu.memory_space<vmem>>, vector<1x64xf32>
    %72 = arith.mulf %71, %68 : vector<1x64xf32>
    %73 = vector.broadcast %70 : vector<1x64xf32> to vector<2x64xf32>
    %74 = arith.mulf %66, %73 : vector<2x64xf32>
    %75 = vector.broadcast %72 : vector<1x64xf32> to vector<2x64xf32>
    %76 = arith.mulf %67, %75 : vector<2x64xf32>
    %77 = arith.subf %74, %76 : vector<2x64xf32>
    %78 = vector.broadcast %70 : vector<1x64xf32> to vector<2x64xf32>
    %79 = arith.mulf %67, %78 : vector<2x64xf32>
    %80 = vector.broadcast %72 : vector<1x64xf32> to vector<2x64xf32>
    %81 = arith.mulf %66, %80 : vector<2x64xf32>
    %82 = arith.addf %79, %81 : vector<2x64xf32>
    %c2_80 = arith.constant 2 : index
    %c0_81 = arith.constant 0 : index
    %83 = vector.load %arg10[%c2_80, %c0_81] : memref<8x64xf32, #tpu.memory_space<vmem>>, vector<2x64xf32>
    %84 = arith.addf %83, %77 : vector<2x64xf32>
    %c2_82 = arith.constant 2 : index
    %c0_83 = arith.constant 0 : index
    %85 = vector.load %arg10[%c2_82, %c0_83] : memref<8x64xf32, #tpu.memory_space<vmem>>, vector<2x64xf32>
    tpu.vector_store %arg10[%c2_82, %c0_83], %84 {strides = array<i32>} : memref<8x64xf32, #tpu.memory_space<vmem>>, vector<2x64xf32>,
    %c2_84 = arith.constant 2 : index
    %c0_85 = arith.constant 0 : index
    %86 = vector.load %arg11[%c2_84, %c0_85] : memref<8x64xf32, #tpu.memory_space<vmem>>, vector<2x64xf32>
    %87 = arith.addf %86, %82 : vector<2x64xf32>
    %c2_86 = arith.constant 2 : index
    %c0_87 = arith.constant 0 : index
    %88 = vector.load %arg11[%c2_86, %c0_87] : memref<8x64xf32, #tpu.memory_space<vmem>>, vector<2x64xf32>
    tpu.vector_store %arg11[%c2_86, %c0_87], %87 {strides = array<i32>} : memref<8x64xf32, #tpu.memory_space<vmem>>, vector<2x64xf32>,
    %c5_88 = arith.constant 5 : index
    %c0_89 = arith.constant 0 : index
    %89 = vector.load %arg2[%c5_88, %c0_89] : memref<8x64xf32, #tpu.memory_space<vmem>>, vector<1x64xf32>
    %c5_90 = arith.constant 5 : index
    %c0_91 = arith.constant 0 : index
    %90 = vector.load %arg10[%c5_90, %c0_91] : memref<8x64xf32, #tpu.memory_space<vmem>>, vector<1x64xf32>
    %91 = arith.mulf %90, %89 : vector<1x64xf32>
    %c5_92 = arith.constant 5 : index
    %c0_93 = arith.constant 0 : index
    %92 = vector.load %arg11[%c5_92, %c0_93] : memref<8x64xf32, #tpu.memory_space<vmem>>, vector<1x64xf32>
    %93 = arith.mulf %92, %89 : vector<1x64xf32>
    %94 = vector.broadcast %91 : vector<1x64xf32> to vector<2x64xf32>
    %95 = arith.mulf %66, %94 : vector<2x64xf32>
    %96 = vector.broadcast %93 : vector<1x64xf32> to vector<2x64xf32>
    %97 = arith.mulf %67, %96 : vector<2x64xf32>
    %98 = arith.subf %95, %97 : vector<2x64xf32>
    %99 = vector.broadcast %91 : vector<1x64xf32> to vector<2x64xf32>
    %100 = arith.mulf %67, %99 : vector<2x64xf32>
    %101 = vector.broadcast %93 : vector<1x64xf32> to vector<2x64xf32>
    %102 = arith.mulf %66, %101 : vector<2x64xf32>
    %103 = arith.addf %100, %102 : vector<2x64xf32>
    %c6_94 = arith.constant 6 : index
    %c0_95 = arith.constant 0 : index
    %104 = vector.load %arg10[%c6_94, %c0_95] : memref<8x64xf32, #tpu.memory_space<vmem>>, vector<2x64xf32>
    %105 = arith.addf %104, %98 : vector<2x64xf32>
    %c6_96 = arith.constant 6 : index
    %c0_97 = arith.constant 0 : index
    %106 = vector.load %arg10[%c6_96, %c0_97] : memref<8x64xf32, #tpu.memory_space<vmem>>, vector<2x64xf32>
    tpu.vector_store %arg10[%c6_96, %c0_97], %105 {strides = array<i32>} : memref<8x64xf32, #tpu.memory_space<vmem>>, vector<2x64xf32>,
    %c6_98 = arith.constant 6 : index
    %c0_99 = arith.constant 0 : index
    %107 = vector.load %arg11[%c6_98, %c0_99] : memref<8x64xf32, #tpu.memory_space<vmem>>, vector<2x64xf32>
    %108 = arith.addf %107, %103 : vector<2x64xf32>
    %c6_100 = arith.constant 6 : index
    %c0_101 = arith.constant 0 : index
    %109 = vector.load %arg11[%c6_100, %c0_101] : memref<8x64xf32, #tpu.memory_space<vmem>>, vector<2x64xf32>
    tpu.vector_store %arg11[%c6_100, %c0_101], %108 {strides = array<i32>} : memref<8x64xf32, #tpu.memory_space<vmem>>, vector<2x64xf32>,
    %c0_102 = arith.constant 0 : index
    %c0_103 = arith.constant 0 : index
    %110 = vector.load %arg3[%c0_102, %c0_103] : memref<8x64xf32, #tpu.memory_space<vmem>>, vector<4x64xf32>
    %c4_104 = arith.constant 4 : index
    %c0_105 = arith.constant 0 : index
    %111 = vector.load %arg3[%c4_104, %c0_105] : memref<8x64xf32, #tpu.memory_space<vmem>>, vector<4x64xf32>
    %c3_106 = arith.constant 3 : index
    %c0_107 = arith.constant 0 : index
    %112 = vector.load %arg2[%c3_106, %c0_107] : memref<8x64xf32, #tpu.memory_space<vmem>>, vector<1x64xf32>
    %c3_108 = arith.constant 3 : index
    %c0_109 = arith.constant 0 : index
    %113 = vector.load %arg10[%c3_108, %c0_109] : memref<8x64xf32, #tpu.memory_space<vmem>>, vector<1x64xf32>
    %114 = arith.mulf %113, %112 : vector<1x64xf32>
    %c3_110 = arith.constant 3 : index
    %c0_111 = arith.constant 0 : index
    %115 = vector.load %arg11[%c3_110, %c0_111] : memref<8x64xf32, #tpu.memory_space<vmem>>, vector<1x64xf32>
    %116 = arith.mulf %115, %112 : vector<1x64xf32>
    %117 = vector.broadcast %114 : vector<1x64xf32> to vector<4x64xf32>
    %118 = arith.mulf %110, %117 : vector<4x64xf32>
    %119 = vector.broadcast %116 : vector<1x64xf32> to vector<4x64xf32>
    %120 = arith.mulf %111, %119 : vector<4x64xf32>
    %121 = arith.subf %118, %120 : vector<4x64xf32>
    %c4_112 = arith.constant 4 : index
    %c0_113 = arith.constant 0 : index
    %122 = vector.load %arg10[%c4_112, %c0_113] : memref<8x64xf32, #tpu.memory_space<vmem>>, vector<4x64xf32>
    %123 = arith.addf %122, %121 : vector<4x64xf32>
    %c4_114 = arith.constant 4 : index
    %c0_115 = arith.constant 0 : index
    %124 = vector.load %arg10[%c4_114, %c0_115] : memref<8x64xf32, #tpu.memory_space<vmem>>, vector<4x64xf32>
    tpu.vector_store %arg10[%c4_114, %c0_115], %123 {strides = array<i32>} : memref<8x64xf32, #tpu.memory_space<vmem>>, vector<4x64xf32>,
    %c0_116 = arith.constant 0 : index
    %c0_117 = arith.constant 0 : index
    %125 = vector.load %arg10[%c0_116, %c0_117] : memref<8x64xf32, #tpu.memory_space<vmem>>, vector<8x64xf32>
    %126 = arith.truncf %125 : vector<8x64xf32> to vector<8x64xbf16>
    %c0_118 = arith.constant 0 : index
    %c0_119 = arith.constant 0 : index
    %127 = vector.load %arg6[%c0_118, %c0_119] : memref<64x32xbf16, #tpu.memory_space<vmem>>, vector<64x32xbf16>
    %cst_120 = arith.constant dense<0.000000e+00> : vector<8x32xf32>
    %128 = tpu.matmul %126, %127, %cst_120 {dimension_numbers = #tpu.dot_dimension_numbers<[1], [0], [0], [1], [0, 0, 1, 1], [], []>} : vector<8x64xbf16>, vector<64x32xbf16>, vector<8x32xf32> -> vector<8x32xf32>
    %129 = vector.broadcast %2 : vector<1x32xf32> to vector<8x32xf32>
    %130 = arith.addf %128, %129 : vector<8x32xf32>
    %131 = arith.addf %130, %9 : vector<8x32xf32>
    %cst_121 = arith.constant dense<0.000000e+00> : vector<8xf32>
    %132 = vector.multi_reduction <add>, %131, %cst_121 [1] : vector<8x32xf32> to vector<8xf32>
    %133 = vector.shape_cast %132 : vector<8xf32> to vector<8x1xf32>
    %cst_122 = arith.constant 3.200000e+01 : f32
    %134 = vector.broadcast %cst_122 : f32 to vector<8x1xf32>
    %135 = arith.divf %133, %134 : vector<8x1xf32>
    %136 = vector.broadcast %135 : vector<8x1xf32> to vector<8x32xf32>
    %137 = arith.subf %131, %136 : vector<8x32xf32>
    %138 = arith.mulf %137, %137 : vector<8x32xf32>
    %cst_123 = arith.constant dense<0.000000e+00> : vector<8xf32>
    %139 = vector.multi_reduction <add>, %138, %cst_123 [1] : vector<8x32xf32> to vector<8xf32>
    %140 = vector.shape_cast %139 : vector<8xf32> to vector<8x1xf32>
    %cst_124 = arith.constant 3.200000e+01 : f32
    %141 = vector.broadcast %cst_124 : f32 to vector<8x1xf32>
    %142 = arith.divf %140, %141 : vector<8x1xf32>
    %143 = vector.broadcast %135 : vector<8x1xf32> to vector<8x32xf32>
    %144 = arith.subf %131, %143 : vector<8x32xf32>
    %cst_125 = arith.constant 9.99999974E-6 : f32
    %145 = vector.broadcast %cst_125 : f32 to vector<8x1xf32>
    %146 = arith.addf %142, %145 : vector<8x1xf32>
    %147 = math.rsqrt %146 : vector<8x1xf32>
    %148 = vector.broadcast %147 : vector<8x1xf32> to vector<8x32xf32>
    %149 = arith.mulf %144, %148 : vector<8x32xf32>
    %150 = vector.broadcast %3 : vector<1x32xf32> to vector<8x32xf32>
    %151 = arith.mulf %149, %150 : vector<8x32xf32>
    %152 = vector.broadcast %4 : vector<1x32xf32> to vector<8x32xf32>
    %153 = arith.addf %151, %152 : vector<8x32xf32>
    %154 = arith.truncf %153 : vector<8x32xf32> to vector<8x32xbf16>
    %c0_126 = arith.constant 0 : index
    %c0_127 = arith.constant 0 : index
    %155 = vector.load %arg7[%c0_126, %c0_127] : memref<32x128xbf16, #tpu.memory_space<vmem>>, vector<32x128xbf16>
    %cst_128 = arith.constant dense<0.000000e+00> : vector<8x128xf32>
    %156 = tpu.matmul %154, %155, %cst_128 {dimension_numbers = #tpu.dot_dimension_numbers<[1], [0], [0], [1], [0, 0, 1, 1], [], []>} : vector<8x32xbf16>, vector<32x128xbf16>, vector<8x128xf32> -> vector<8x128xf32>
    %157 = vector.broadcast %5 : vector<1x128xf32> to vector<8x128xf32>
    %158 = arith.addf %156, %157 : vector<8x128xf32>
    %cst_129 = arith.constant 5.000000e-01 : f32
    %159 = vector.broadcast %cst_129 : f32 to vector<8x128xf32>
    %160 = arith.mulf %159, %158 : vector<8x128xf32>
    %cst_130 = arith.constant 0.707106769 : f32
    %161 = vector.broadcast %cst_130 : f32 to vector<8x128xf32>
    %162 = arith.mulf %158, %161 : vector<8x128xf32>
    %163 = math.erf %162 : vector<8x128xf32>
    %cst_131 = arith.constant 1.000000e+00 : f32
    %164 = vector.broadcast %cst_131 : f32 to vector<8x128xf32>
    %165 = arith.addf %164, %163 : vector<8x128xf32>
    %166 = arith.mulf %160, %165 : vector<8x128xf32>
    %167 = arith.truncf %166 : vector<8x128xf32> to vector<8x128xbf16>
    %c0_132 = arith.constant 0 : index
    %c0_133 = arith.constant 0 : index
    %168 = vector.load %arg8[%c0_132, %c0_133] : memref<128x32xbf16, #tpu.memory_space<vmem>>, vector<128x32xbf16>
    %cst_134 = arith.constant dense<0.000000e+00> : vector<8x32xf32>
    %169 = tpu.matmul %167, %168, %cst_134 {dimension_numbers = #tpu.dot_dimension_numbers<[1], [0], [0], [1], [0, 0, 1, 1], [], []>} : vector<8x128xbf16>, vector<128x32xbf16>, vector<8x32xf32> -> vector<8x32xf32>
    %170 = vector.broadcast %6 : vector<1x32xf32> to vector<8x32xf32>
    %171 = arith.addf %169, %170 : vector<8x32xf32>
    %172 = arith.addf %171, %153 : vector<8x32xf32>
    %cst_135 = arith.constant dense<0.000000e+00> : vector<8xf32>
    %173 = vector.multi_reduction <add>, %172, %cst_135 [1] : vector<8x32xf32> to vector<8xf32>
    %174 = vector.shape_cast %173 : vector<8xf32> to vector<8x1xf32>
    %cst_136 = arith.constant 3.200000e+01 : f32
    %175 = vector.broadcast %cst_136 : f32 to vector<8x1xf32>
    %176 = arith.divf %174, %175 : vector<8x1xf32>
    %177 = vector.broadcast %176 : vector<8x1xf32> to vector<8x32xf32>
    %178 = arith.subf %172, %177 : vector<8x32xf32>
    %179 = arith.mulf %178, %178 : vector<8x32xf32>
    %cst_137 = arith.constant dense<0.000000e+00> : vector<8xf32>
    %180 = vector.multi_reduction <add>, %179, %cst_137 [1] : vector<8x32xf32> to vector<8xf32>
    %181 = vector.shape_cast %180 : vector<8xf32> to vector<8x1xf32>
    %cst_138 = arith.constant 3.200000e+01 : f32
    %182 = vector.broadcast %cst_138 : f32 to vector<8x1xf32>
    %183 = arith.divf %181, %182 : vector<8x1xf32>
    %184 = vector.broadcast %176 : vector<8x1xf32> to vector<8x32xf32>
    %185 = arith.subf %172, %184 : vector<8x32xf32>
    %cst_139 = arith.constant 9.99999974E-6 : f32
    %186 = vector.broadcast %cst_139 : f32 to vector<8x1xf32>
    %187 = arith.addf %183, %186 : vector<8x1xf32>
    %188 = math.rsqrt %187 : vector<8x1xf32>
    %189 = vector.broadcast %188 : vector<8x1xf32> to vector<8x32xf32>
    %190 = arith.mulf %185, %189 : vector<8x32xf32>
    %191 = vector.broadcast %7 : vector<1x32xf32> to vector<8x32xf32>
    %192 = arith.mulf %190, %191 : vector<8x32xf32>
    %193 = vector.broadcast %8 : vector<1x32xf32> to vector<8x32xf32>
    %194 = arith.addf %192, %193 : vector<8x32xf32>
    %c0_140 = arith.constant 0 : index
    %c0_141 = arith.constant 0 : index
    %195 = vector.load %arg9[%c0_140, %c0_141] : memref<8x32xf32, #tpu.memory_space<vmem>>, vector<8x32xf32>
    tpu.vector_store %arg9[%c0_140, %c0_141], %194 {strides = array<i32>} : memref<8x32xf32, #tpu.memory_space<vmem>>, vector<8x32xf32>,
    return
  }
  func.func @transform_0(%arg0: i32) -> (i32, i32) {
    %c0_i32 = arith.constant 0 : i32
    %c0_i32_0 = arith.constant 0 : i32
    return %arg0, %c0_i32 : i32, i32
  }
  func.func @transform_1(%arg0: i32) -> (i32, i32) {
    %c0_i32 = arith.constant 0 : i32
    %c0_i32_0 = arith.constant 0 : i32
    return %arg0, %c0_i32 : i32, i32
  }
  func.func @transform_2(%arg0: i32) -> (i32, i32) {
    %c0_i32 = arith.constant 0 : i32
    %c0_i32_0 = arith.constant 0 : i32
    %c0_i32_1 = arith.constant 0 : i32
    return %c0_i32, %c0_i32_0 : i32, i32
  }
  func.func @transform_3(%arg0: i32) -> (i32, i32) {
    %c0_i32 = arith.constant 0 : i32
    %c0_i32_0 = arith.constant 0 : i32
    %c0_i32_1 = arith.constant 0 : i32
    return %c0_i32, %c0_i32_0 : i32, i32
  }
  func.func @transform_4(%arg0: i32) -> (i32, i32) {
    %c0_i32 = arith.constant 0 : i32
    %c0_i32_0 = arith.constant 0 : i32
    %c0_i32_1 = arith.constant 0 : i32
    return %c0_i32, %c0_i32_0 : i32, i32
  }
  func.func @transform_5(%arg0: i32) -> (i32, i32) {
    %c0_i32 = arith.constant 0 : i32
    %c0_i32_0 = arith.constant 0 : i32
    %c0_i32_1 = arith.constant 0 : i32
    return %c0_i32, %c0_i32_0 : i32, i32
  }
  func.func @transform_6(%arg0: i32) -> (i32, i32) {
    %c0_i32 = arith.constant 0 : i32
    %c0_i32_0 = arith.constant 0 : i32
    %c0_i32_1 = arith.constant 0 : i32
    return %c0_i32, %c0_i32_0 : i32, i32
  }
  func.func @transform_7(%arg0: i32) -> (i32, i32) {
    %c0_i32 = arith.constant 0 : i32
    %c0_i32_0 = arith.constant 0 : i32
    %c0_i32_1 = arith.constant 0 : i32
    return %c0_i32, %c0_i32_0 : i32, i32
  }
  func.func @transform_8(%arg0: i32) -> (i32, i32) {
    %c0_i32 = arith.constant 0 : i32
    %c0_i32_0 = arith.constant 0 : i32
    return %arg0, %c0_i32 : i32, i32
  }
}

</mosaic_0001>

<bundles_post_ra>
// kernel: tpu_custom_call.1
= control target key start
LH: loop header
LB: loop body
LE: loop exit
PB: predicated region body
PF: predicated region fallthrough
CT: control target
= control target key end

     0   :  { %13 = vsyncpa [#allocation5], 0  ;;  %s1322_s0 = inlined_call_operand.vmem [shape: f32[16,32], index: 0, kind: input, shape index: {}]   ;;  %s1323_s1 = inlined_call_operand.vmem [shape: f32[16,64], index: 1, kind: input, shape index: {}]   ;;  %s1324_s2 = inlined_call_operand.vmem [shape: f32[8,64], index: 2, kind: input, shape index: {}]   ;;  %s1325_s3 = inlined_call_operand.vmem [shape: f32[9,128], index: 3, kind: input, shape index: {}]   ;;  %s1326_s4 = inlined_call_operand.vmem [shape: bf16[32,64], index: 4, kind: input, shape index: {}]   ;;  %s1327_s5 = inlined_call_operand.vmem [shape: bf16[64,32], index: 5, kind: input, shape index: {}]   ;;  %s1328_s6 = inlined_call_operand.vmem [shape: bf16[32,128], index: 6, kind: input, shape index: {}]   ;;  %s1329_s7 = inlined_call_operand.vmem [shape: bf16[128,32], index: 7, kind: input, shape index: {}]   ;;  %s1330_s8 = inlined_call_operand.hbm [shape: f32[16,32], index: 8, kind: output, shape index: {}]  }
   0x1   :  { %15 = vsyncpa [#allocation5 + $0x1], 0  ;;  %s1094_s27 = smov 0   ;;  %s1096_s28 = smov 0  }
   0x2   :  { %s1098_s29 = smov 0   ;;  %s1100_s30 = smov 0  }
   0x3 LB: > { %s1115_s9 = sadd.s32 4294967295, %s1045_s30   ;;  %s830_s10 = sadd.s32 4294967294, %s1045_s30   ;;  %s1045_s30 = sphi %s1100_s30, %s1336_s30   ;;  %s1041_s29 = sphi %s1098_s29, %s1335_s29   ;;  %s1037_s28 = sphi %s1096_s28, %s1334_s28   ;;  %s1033_s27 = sphi %s1094_s27, %s1333_s27  }
   0x4   : > { %s1119_s11 = sadd.s32 1, %s1045_s30   ;;  %s206_s12 = sadd.s32 1, %s1041_s29 }
   0x5   : > { %s203_s13 = ssub.s32 %s1045_s30, %s1119_s11  ;;  %p216_p0 = scmp.ne.s32.totalorder %s1041_s29, %s1037_s28 }
   0x6   : > { %p204_p1 = scmp.eq.s32.totalorder %s203_s13, 0  ;;  %p217_p2 = scmp.eq.s32.totalorder %s1115_s9, 1 }
   0x7   : > { %p222_p3 = scmp.ne.s32.totalorder %s1037_s28, %s1033_s27  ;;  %p223_p4 = scmp.eq.s32.totalorder %s830_s10, 1 }
   0x8   : > { %s1130_s14 = scalar_select %p204_p1, %s1041_s29, %s206_s12  }
   0x9   : > { %p1132_p5 = por %p217_p2, %p216_p0  ;;  %p1136_p6 = por %p223_p4, %p222_p3 }
   0xa   : > { %p833_p7 = scmp.ge.s32.totalorder %s1045_s30, 1  ;;  %p273_p8 = scmp.lt.s32.totalorder %s1045_s30, 3 }
   0xc   : > { %p274_p9 = pnand %p833_p7, %p273_p8 }
   0xd   : > { %p310_p10 = scmp.lt.s32.totalorder (!%p274_p9), %s1115_s9, 1  ;;  %s307_s19 = sand.u32 (!%p274_p9), 1, %s1037_s28  }
   0xe   : > { %277 = sbr.rel (%p274_p9) target bundleno = 1213 (0x4bd), region = 52  ;;  %s906_s20 = sshll.u32 (!%p274_p9), %s1115_s9, 3 }
   0xf   : > { %s754_s26 = scalar_lea.hbm (!%p274_p9), %s1330_s8, %s906_s20  ;;  %s744_s18 = scalar_lea.sflag (!%p274_p9), [#allocation5], %s307_s19 }
  0x10   : > { %s758_s17 = sshll.u32 (!%p274_p9), %s754_s26, 4  ;;  %s759_s17 = int_to_ptr.hbm [resolvable:$true] %s758_s17 }
  0x13   : > { %v910_v0 = vld [vmem:[%s1326_s4 + $0x8] sm:$0xff]  ;;  %v909_v1 = vld [vmem:[%s1326_s4] sm:$0xff]  ;;  %s311_s21 = scalar_select %p310_p10, %s1115_s9, 1  ;;  %vm347_vm0 = vcmask 261120   ;;  %v914_v4 = vld [vmem:[%s1327_s5 + $0x18] sm:$0xff]  ;;  %vm366_vm1 = vcmask 523264  }
  0x14   : > { %357 = vmatpush.bf16.msra.mxu0 %v910_v0  ;;  %v1047_v5 = vmov 0.0   ;;  %515 = vmatpush.bf16.msra.mxu1 %v914_v4  ;;  %v913_v6 = vld [vmem:[%s1327_s5 + $0x10] sm:$0xff]  ;;  %v912_v7 = vld [vmem:[%s1327_s5 + $0x8] sm:$0xff]  ;;  %v911_v8 = vld [vmem:[%s1327_s5] sm:$0xff]  ;;  %vm378_vm2 = vcmask 516096   ;;  %vm433_vm3 = vcmask 517120  }
  0x15   : > { %s835_s22 = sshll.u32 %s311_s21, 3  ;;  %368 = vst.msk [vmem:[#allocation3] sm:$0xff] %vm366_vm1, %v1047_v5  ;;  %v966_v9 = vld [vmem:[%s1325_s3] ss:$0 sm:$0xff]  ;;  %v967_v10 = vld [vmem:[%s1325_s3 + $0x1] ss:$0 sm:$0xff] }
  0x16   : > { %s313_s25 = scalar_lea.vmem %s1322_s0, %s835_s22  ;;  %s1181_s12 = scalar_lea.vmem %s1323_s1, %s835_s22  ;;  %v369_v18 = vld [vmem:[%s1324_s2] sm:$0x1]  ;;  %v370_v19 = vld [vmem:[%s1324_s2 + $0x4] sm:$0x1]  ;;  %vm471_vm4 = vcmask 519168  }
  0x17   : > { %v1153_v2 = vld [vmem:[%s313_s25] sm:$0xff]  ;;  %s834_s22 = sshll.u32 %s307_s19, 3  ;;  %s997_s21 = sshra.s32 %s759_s17, 4  ;;  %s998_s21 = int_to_ptr.hbm [resolvable:$true] %s997_s21 }
  0x18   : > { %358 = vmatpush.bf16.msra.mxu0 %v909_v1  ;;  %v329_v3 = vpack.c.bf16 %v1153_v2, %v1153_v2  ;;  %516 = vmatpush.bf16.msra.mxu1 %v913_v6  ;;  %v371_v15 = vld [vmem:[%s1181_s12] sm:$0x1]  ;;  %v383_v16 = vld [vmem:[%s1181_s12 + $0x2] sm:$0x1]  ;;  %v394_v17 = vld [vmem:[%s1181_s12 + $0x4] sm:$0x1]  ;;  %p1004_p0 = scmp.lt.s32.totalorder %s998_s21, %s1330_s8 }
  0x19   : > { %v405_v22 = vld [vmem:[%s1181_s12 + $0x6] sm:$0x1]  ;;  %v418_v53 = vld [vmem:[%s1181_s12 + $0x1] sm:$0x1]  ;;  %v438_v57 = vld [vmem:[%s1181_s12 + $0x5] sm:$0x1] }
  0x1a   : > { %v416_v58 = vld [vmem:[%s1324_s2] sm:$0x3]  ;;  %v417_v59 = vld [vmem:[%s1324_s2 + $0x4] sm:$0x3]  ;;  %s309_s13 = scalar_lea.vmem [#allocation4], %s834_s22  ;;  %s999_s20 = scalar_lea.hbm %s998_s21, 8 }
  0x1b   : > { %845 = vmatmul.msk.bf16.vlgmr.msra.gmra.mxu0 %vm347_vm0, %v329_v3  ;;  %s756_s9 = sshll.u32 %s309_s13, 4  ;;  %p1000_p11 = scmp.ne.s32.totalorder %s998_s21, %s999_s20  ;;  %s757_s9 = int_to_ptr.vmem [resolvable:$true] %s756_s9 }
  0x1c   : > { %517 = vmatpush.bf16.msra.mxu1 %v912_v7  ;;  %v380_v26 = vld [vmem:[#allocation3 + $0x1] sm:$0x1]  ;;  %v391_v33 = vld [vmem:[#allocation3 + $0x3] sm:$0x1]  ;;  %v402_v42 = vld [vmem:[#allocation3 + $0x5] sm:$0x1] }
  0x1d   : > { %v413_v48 = vld [vmem:[#allocation3 + $0x7] sm:$0x1]  ;;  %p1001_p12 = pnand %p1000_p11, %p1132_p5  ;;  %s1003_s22 = scalar_lea.hbm %s1330_s8, 16 }
  0x1e   : > { %p1005_p1 = scmp.lt.s32.totalorder %s1003_s22, %s999_s20 }
  0x1f   : > { %p1002_p13 = pneg %p1001_p12 }
  0x20   : > { %518 = vmatpush.bf16.msra.mxu1 %v911_v8  ;;  %p1006_p2 = por %p1005_p1, %p1004_p0 }
  0x22   : > { %p1007_p3 = pnand %p1006_p2, %p1002_p13 }
  0x98   : > { %v360_v11 = vpop.f32.mrf.mxu0 }
  0x99   : > { %v361_v12 = vadd.f32 %v966_v9, %v360_v11 }
  0x9b   : > { %v365_v13 = vmul.f32 %v967_v10, %v361_v12 }
  0x9d   : > { %367 = vst.msk [vmem:[#allocation2] sm:$0xff] %vm366_vm1, %v365_v13 }
  0xa0   : > { %v362_v14 = vpop.f32.mrf.mxu0 }
  0xa4   : > { %v372_v20 = vld [vmem:[#allocation2] sm:$0x1]  ;;  %v384_v21 = vld [vmem:[#allocation2 + $0x2] sm:$0x1]  ;;  %v395_v25 = vld [vmem:[#allocation2 + $0x4] sm:$0x1] }
  0xa5   : > { %v373_v23 = vmul.f32 %v372_v20, %v371_v15  ;;  %v385_v24 = vmul.f32 %v384_v21, %v383_v16  ;;  %v396_v27 = vmul.f32 %v395_v25, %v394_v17  ;;  %v406_v28 = vld [vmem:[#allocation2 + $0x6] sm:$0x1]  ;;  %v376_v34 = vld [vmem:[#allocation2 + $0x1] sm:$0x1]  ;;  %v388_v35 = vld [vmem:[#allocation2 + $0x3] sm:$0x1] }
  0xa6   : > { %v407_v38 = vmul.f32 %v406_v28, %v405_v22  ;;  %v399_v44 = vld [vmem:[#allocation2 + $0x5] sm:$0x1]  ;;  %v410_v50 = vld [vmem:[#allocation2 + $0x7] sm:$0x1] }
  0xa7   : > { %v374_v29 = vmul.f32 %v373_v23, %v369_v18  ;;  %v375_v30 = vmul.f32 %v373_v23, %v370_v19  ;;  %v386_v31 = vmul.f32 %v385_v24, %v369_v18  ;;  %v387_v32 = vmul.f32 %v385_v24, %v370_v19 }
  0xa8   : > { %v397_v36 = vmul.f32 %v396_v27, %v369_v18  ;;  %v398_v37 = vmul.f32 %v396_v27, %v370_v19  ;;  %v408_v45 = vmul.f32 %v407_v38, %v369_v18  ;;  %v409_v46 = vmul.f32 %v407_v38, %v370_v19 }
  0xa9   : > { %v377_v39 = vadd.f32 %v376_v34, %v374_v29  ;;  %v381_v40 = vadd.f32 %v380_v26, %v375_v30  ;;  %v389_v41 = vadd.f32 %v388_v35, %v386_v31  ;;  %v392_v43 = vadd.f32 %v391_v33, %v387_v32  ;;  %v459_v26 = vld [vmem:[%s1181_s12 + $0x3] sm:$0x1]  ;;  %v458_v32 = vld [vmem:[%s1324_s2 + $0x4] sm:$0xf] }
  0xaa   : > { %v400_v47 = vadd.f32 %v399_v44, %v397_v36  ;;  %v403_v49 = vadd.f32 %v402_v42, %v398_v37  ;;  %v411_v51 = vadd.f32 %v410_v50, %v408_v45  ;;  %v414_v52 = vadd.f32 %v413_v48, %v409_v46  ;;  %v457_v30 = vld [vmem:[%s1324_s2] sm:$0xf] }
  0xab   : > { %379 = vst.msk [vmem:[#allocation2 + $0x1] sm:$0x1] %vm378_vm2, %v377_v39  ;;  %v968_v42 = vld [vmem:[%s1325_s3 + $0x2] ss:$0 sm:$0xff]  ;;  %v1048_v48 = vmov 32.0  }
  0xac   : > { %382 = vst.msk [vmem:[#allocation3 + $0x1] sm:$0x1] %vm378_vm2, %v381_v40  ;;  %975 = vrcp.f32 %v1048_v48 }
  0xad   : > { %390 = vst.msk [vmem:[#allocation2 + $0x3] sm:$0x1] %vm378_vm2, %v389_v41 }
  0xae   : > { %393 = vst.msk [vmem:[#allocation3 + $0x3] sm:$0x1] %vm378_vm2, %v392_v43 }
  0xaf   : > { %401 = vst.msk [vmem:[#allocation2 + $0x5] sm:$0x1] %vm378_vm2, %v400_v47 }
  0xb0   : > { %404 = vst.msk [vmem:[#allocation3 + $0x5] sm:$0x1] %vm378_vm2, %v403_v49 }
  0xb1   : > { %412 = vst.msk [vmem:[#allocation2 + $0x7] sm:$0x1] %vm378_vm2, %v411_v51 }
  0xb2   : > { %415 = vst.msk [vmem:[#allocation3 + $0x7] sm:$0x1] %vm378_vm2, %v414_v52  ;;  %v419_v54 = vld [vmem:[#allocation2 + $0x1] sm:$0x1]  ;;  %v976_v49 = vpop.eup %975 }
  0xb3   : > { %v420_v55 = vmul.f32 %v419_v54, %v418_v53  ;;  %v421_v56 = vld [vmem:[#allocation3 + $0x1] sm:$0x1]  ;;  %v529_v50 = vmul.f32 32.0, %v976_v49  ;;  %vm533_vm5 = vweird.f32 %v976_v49 }
  0xb4   : > { %v422_v60 = vmul.f32 %v421_v56, %v418_v53  ;;  %v431_v12 = vld [vmem:[#allocation2 + $0x2] sm:$0x3] }
  0xb5   : > { %v423_v61 = vperm.slane %v420_v55, 0  ;;  %v435_v13 = vld [vmem:[#allocation3 + $0x2] sm:$0x3]  ;;  %v530_v51 = vsub.f32 1.0, %v529_v50 }
  0xb6   : > { %v425_v62 = vperm.slane %v422_v60, 0  ;;  %v439_v63 = vld [vmem:[#allocation2 + $0x5] sm:$0x1] }
  0xb7   : > { %v424_v0 = vmul.f32 %v423_v61, %v416_v58  ;;  %v428_v1 = vmul.f32 %v423_v61, %v417_v59  ;;  %v440_v3 = vmul.f32 %v439_v63, %v438_v57  ;;  %v441_v4 = vld [vmem:[#allocation3 + $0x5] sm:$0x1]  ;;  %v531_v52 = vmul.f32 %v976_v49, %v530_v51  ;;  %v915_v60 = vld [vmem:[%s1328_s6] sm:$0xff] }
  0xb8   : > { %v426_v5 = vmul.f32 %v425_v62, %v417_v59  ;;  %v429_v6 = vmul.f32 %v425_v62, %v416_v58  ;;  %v442_v7 = vmul.f32 %v441_v4, %v438_v57  ;;  %v451_v22 = vld [vmem:[#allocation2 + $0x6] sm:$0x3] }
  0xb9   : > { %v443_v8 = vperm.slane %v440_v3, 0  ;;  %v454_v23 = vld [vmem:[#allocation3 + $0x6] sm:$0x3]  ;;  %v532_v53 = vadd.f32 %v976_v49, %v531_v52 }
  0xba   : > { %v427_v9 = vsub.f32 %v424_v0, %v426_v5  ;;  %v430_v10 = vadd.f32 %v429_v6, %v428_v1  ;;  %v445_v11 = vperm.slane %v442_v7, 0  ;;  %v969_v7 = vld [vmem:[%s1325_s3 + $0x3] ss:$0 sm:$0xff] }
  0xbb   : > { %v444_v14 = vmul.f32 %v443_v8, %v416_v58  ;;  %v448_v15 = vmul.f32 %v443_v8, %v417_v59  ;;  %v1226_v54 = vsel %vm533_vm5, %v976_v49, %v532_v53 }
  0xbc   : > { %v432_v16 = vadd.f32 %v431_v12, %v427_v9  ;;  %v436_v17 = vadd.f32 %v435_v13, %v430_v10  ;;  %v446_v18 = vmul.f32 %v445_v11, %v417_v59  ;;  %v449_v19 = vmul.f32 %v445_v11, %v416_v58  ;;  %v916_v59 = vld [vmem:[%s1328_s6 + $0x8] sm:$0xff]  ;;  %v970_v10 = vld [vmem:[%s1325_s3 + $0x4] ss:$0 sm:$0xff] }
  0xbd   : > { %585 = vmatpush.bf16.msra.mxu2 %v916_v59 }
  0xbe   : > { %434 = vst.msk [vmem:[#allocation2 + $0x2] sm:$0x3] %vm433_vm3, %v432_v16  ;;  %v447_v20 = vsub.f32 %v444_v14, %v446_v18  ;;  %v450_v21 = vadd.f32 %v449_v19, %v448_v15  ;;  %v924_v14 = vld [vmem:[%s1329_s7 + $0x38] sm:$0xff]  ;;  %v971_v15 = vld [vmem:[%s1325_s3 + $0x5] ss:$0 sm:$0xff]  ;;  %v923_v16 = vld [vmem:[%s1329_s7 + $0x30] sm:$0xff] }
  0xbf   : > { %437 = vst.msk [vmem:[#allocation3 + $0x2] sm:$0x3] %vm433_vm3, %v436_v17  ;;  %702 = vmatpush.bf16.msra.mxu3 %v924_v14  ;;  %v922_v19 = vld [vmem:[%s1329_s7 + $0x28] sm:$0xff] }
  0xc0   : > { %v452_v24 = vadd.f32 %v451_v22, %v447_v20  ;;  %v455_v25 = vadd.f32 %v454_v23, %v450_v21  ;;  %v921_v22 = vld [vmem:[%s1329_s7 + $0x20] sm:$0xff] }
  0xc1   : > { %586 = vmatpush.bf16.msra.mxu2 %v915_v60 }
  0xc2   : > { %453 = vst.msk [vmem:[#allocation2 + $0x6] sm:$0x3] %vm433_vm3, %v452_v24 }
  0xc3   : > { %456 = vst.msk [vmem:[#allocation3 + $0x6] sm:$0x3] %vm433_vm3, %v455_v25  ;;  %703 = vmatpush.bf16.msra.mxu3 %v923_v16 }
  0xc5   : > { %v460_v27 = vld [vmem:[#allocation2 + $0x3] sm:$0x1] }
  0xc6   : > { %v461_v28 = vmul.f32 %v460_v27, %v459_v26  ;;  %v462_v29 = vld [vmem:[#allocation3 + $0x3] sm:$0x1]  ;;  %v920_v27 = vld [vmem:[%s1329_s7 + $0x18] sm:$0xff] }
  0xc7   : > { %v463_v31 = vmul.f32 %v462_v29, %v459_v26  ;;  %704 = vmatpush.bf16.msra.mxu3 %v922_v19 }
  0xc8   : > { %v464_v33 = vperm.slane %v461_v28, 0 }
  0xc9   : > { %v466_v34 = vperm.slane %v463_v31, 0  ;;  %v469_v38 = vld [vmem:[#allocation2 + $0x4] sm:$0xf] }
  0xca   : > { %v465_v35 = vmul.f32 %v464_v33, %v457_v30 }
  0xcb   : > { %v467_v36 = vmul.f32 %v466_v34, %v458_v32  ;;  %705 = vmatpush.bf16.msra.mxu3 %v921_v22  ;;  %v919_v32 = vld [vmem:[%s1329_s7 + $0x10] sm:$0xff] }
  0xcd   : > { %v468_v37 = vsub.f32 %v465_v35, %v467_v36  ;;  %v918_v36 = vld [vmem:[%s1329_s7 + $0x8] sm:$0xff] }
  0xcf   : > { %v470_v39 = vadd.f32 %v469_v38, %v468_v37  ;;  %706 = vmatpush.bf16.msra.mxu3 %v920_v27 }
  0xd1   : > { %472 = vst.msk [vmem:[#allocation2 + $0x4] sm:$0xf] %vm471_vm4, %v470_v39 }
  0xd3   : > { %707 = vmatpush.bf16.msra.mxu3 %v919_v32 }
  0xd7   : > { %708 = vmatpush.bf16.msra.mxu3 %v918_v36 }
  0xd8   : > { %v473_v40 = vld [vmem:[#allocation2] sm:$0xff] }
  0xd9   : > { %v474_v41 = vpack.c.bf16 %v473_v40, %v473_v40  ;;  %v917_v40 = vld [vmem:[%s1329_s7] sm:$0xff] }
  0xdb   : > { %862 = vmatmul.msk.bf16.vlgmr.msra.gmra.mxu1 %vm366_vm1, %v474_v41  ;;  %709 = vmatpush.bf16.msra.mxu3 %v917_v40 }
 0x158   : > { %v520_v43 = vpop.f32.mrf.mxu1 }
 0x159   : > { %v521_v44 = vadd.f32 %v968_v42, %v520_v43 }
 0x15b   : > { %v524_v45 = vadd.f32 %v521_v44, %v1153_v2 }
 0x15d   : > { %v525_v46 = vsel %vm347_vm0, %v524_v45, 0.0 }
 0x15e   : > { %526 = vadd.xlane.f32.xlu0 %v525_v46 }
 0x160   : > { %v522_v47 = vpop.f32.mrf.mxu1 }
 0x1d1   : > { %v527_v55 = vpop.xlane.xlu0 %526 }
 0x1d2   : > { %v535_v56 = vmul.f32 %v1226_v54, %v527_v55 }
 0x1d4   : > { %v536_v57 = vsub.f32 %v524_v45, %v535_v56 }
 0x1d6   : > { %v537_v58 = vmul.f32 %v536_v57, %v536_v57 }
 0x1d8   : > { %v538_v2 = vsel %vm347_vm0, %v537_v58, 0.0 }
 0x1d9   : > { %539 = vadd.xlane.f32.xlu0 %v538_v2 }
 0x24c   : > { %v540_v61 = vpop.xlane.xlu0 %539 }
 0x24d   : > { %v541_v62 = vmul.f32 %v540_v61, %v1226_v54 }
 0x24f   : > { %v542_v63 = vadd.f32 1e-05, %v541_v62 }
 0x251   : > { %977 = vrsqrt.f32 %v542_v63  ;;  %vm549_vm7 = vweird.f32 %v542_v63 }
 0x257   : > { %v978_v0 = vpop.eup %977 }
 0x258   : > { %v544_v1 = vmul.f32 %v978_v0, %v542_v63  ;;  %vm550_vm6 = vweird.f32 %v978_v0 }
 0x259   : > { %vm551_vm8 = vmor %vm549_vm7, %vm550_vm6 }
 0x25a   : > { %v545_v3 = vmul.f32 %v978_v0, %v544_v1 }
 0x25c   : > { %v546_v4 = vmul.f32 0.5, %v545_v3  ;;  %v972_v3 = vld [vmem:[%s1325_s3 + $0x6] ss:$0 sm:$0xff] }
 0x25e   : > { %v547_v5 = vsub.f32 1.5, %v546_v4 }
 0x260   : > { %v548_v6 = vmul.f32 %v978_v0, %v547_v5 }
 0x262   : > { %v552_v8 = vsel %vm551_vm8, %v978_v0, %v548_v6 }
 0x263   : > { %v553_v9 = vmul.f32 %v552_v8, %v536_v57 }
 0x265   : > { %v555_v11 = vmul.f32 %v969_v7, %v553_v9 }
 0x267   : > { %v1243_v12 = vadd.f32 %v970_v10, %v555_v11 }
 0x269   : > { %v558_v13 = vpack.c.bf16 %v1243_v12, %v1243_v12 }
 0x26b   : > { %871 = vmatmul.msk.bf16.vlgmr.msra.gmra.mxu2 %vm347_vm0, %v558_v13 }
 0x2ee   : > { %v588_v17 = vpop.f32.mrf.mxu2 }
 0x2ef   : > { %v589_v18 = vadd.f32 %v971_v15, %v588_v17 }
 0x2f1   : > { %v593_v20 = vmul.f32 0.70710677, %v589_v18  ;;  %v592_v62 = vmul.f32 0.5, %v589_v18 }
 0x2f3   : > { %v594_v21 = vmul.f32 %v593_v20, %v593_v20 }
 0x2f5   : > { %v595_v23 = vmin.f32 %v594_v21, 16.0 }
 0x2f6   : > { %v590_v24 = vpop.f32.mrf.mxu2 }
 0x2f7   : > { %v596_v25 = vmul.f32 2.1237322e-06, %v595_v23  ;;  %v607_v26 = vmul.f32 3.8918573e-05, %v595_v23 }
 0x2f9   : > { %v597_v28 = vadd.f32 0.00028619796, %v596_v25  ;;  %v608_v29 = vadd.f32 0.001143296, %v607_v26  ;;  %v974_v25 = vld [vmem:[%s1325_s3 + $0x8] ss:$0 sm:$0xff] }
 0x2fb   : > { %v598_v30 = vmul.f32 %v597_v28, %v595_v23  ;;  %v609_v31 = vmul.f32 %v608_v29, %v595_v23 }
 0x2fd   : > { %v610_v33 = vadd.f32 0.014752088, %v609_v31  ;;  %v599_v34 = vadd.f32 0.0036580483, %v598_v30 }
 0x2ff   : > { %v611_v35 = vmul.f32 %v610_v33, %v595_v23  ;;  %v600_v38 = vmul.f32 %v599_v34, %v595_v23 }
 0x301   : > { %v612_v37 = vadd.f32 0.112945676, %v611_v35  ;;  %v601_v42 = vadd.f32 0.05243302, %v600_v38 }
 0x303   : > { %v613_v39 = vmul.f32 %v612_v37, %v595_v23  ;;  %v602_v45 = vmul.f32 %v601_v42, %v595_v23 }
 0x305   : > { %v614_v41 = vadd.f32 0.4994258, %v613_v39  ;;  %v603_v46 = vadd.f32 0.18741608, %v602_v45 }
 0x307   : > { %v615_v43 = vmul.f32 %v614_v41, %v595_v23  ;;  %v604_v48 = vmul.f32 %v603_v46, %v595_v23  ;;  %v973_v23 = vld [vmem:[%s1325_s3 + $0x7] ss:$0 sm:$0xff] }
 0x309   : > { %v616_v44 = vadd.f32 1.0, %v615_v43  ;;  %v605_v52 = vadd.f32 1.1283791, %v604_v48 }
 0x30b   : > { %979 = vrcp.f32 %v616_v44  ;;  %v628_v51 = vand.u32 2147483648, %v616_v44  ;;  %v626_v55 = vand.u32 2147483647, %v616_v44  ;;  %vm622_vm10 = vweird.f32 %v616_v44 }
 0x30c   : > { %v606_v58 = vmul.f32 %v605_v52, %v593_v20 }
 0x30d   : > { %v629_v57 = vor.u32 1.1754944e-38, %v628_v51  ;;  %vm627_vm12 = vcmp.eq.f32.partialorder %v626_v55, 8.507059e+37 }
 0x311   : > { %v980_v47 = vpop.eup %979 }
 0x312   : > { %v618_v49 = vmul.f32 %v980_v47, %v616_v44  ;;  %vm623_vm9 = vweird.f32 %v980_v47 }
 0x313   : > { %vm624_vm11 = vmor %vm622_vm10, %vm623_vm9 }
 0x314   : > { %v619_v50 = vsub.f32 1.0, %v618_v49 }
 0x316   : > { %v620_v53 = vmul.f32 %v980_v47, %v619_v50 }
 0x318   : > { %v621_v56 = vadd.f32 %v980_v47, %v620_v53 }
 0x31a   : > { %v625_v2 = vsel %vm624_vm11, %v980_v47, %v621_v56 }
 0x31b   : > { %v630_v59 = vsel %vm627_vm12, %v629_v57, %v625_v2 }
 0x31c   : > { %v631_v60 = vmul.f32 %v630_v59, %v606_v58 }
 0x31e   : > { %v872_v61 = vclamps-f32 %v631_v60, 1.0 }
 0x320   : > { %v634_v63 = vadd.f32 1.0, %v872_v61 }
 0x322   : > { %v635_v0 = vmul.f32 %v634_v63, %v592_v62 }
 0x324   : > { %v636_v1 = vpack.c.bf16 %v635_v0, %v635_v0 }
 0x326   : > { %710 = vmatmul.bf16.vlgmr.msra.gmra.mxu3 %v636_v1 }
 0x3a9   : > { %v711_v4 = vpop.f32.mrf.mxu3 }
 0x3aa   : > { %v712_v5 = vadd.f32 %v972_v3, %v711_v4 }
 0x3ac   : > { %v715_v6 = vadd.f32 %v712_v5, %v1243_v12 }
 0x3ae   : > { %v716_v7 = vsel %vm347_vm0, %v715_v6, 0.0 }
 0x3af   : > { %717 = vadd.xlane.f32.xlu1 %v716_v7 }
 0x3b1   : > { %v713_v8 = vpop.f32.mrf.mxu3 }
 0x422   : > { %v718_v9 = vpop.xlane.xlu1 %717 }
 0x423   : > { %v719_v10 = vmul.f32 %v718_v9, %v1226_v54 }
 0x425   : > { %v720_v11 = vsub.f32 %v715_v6, %v719_v10 }
 0x427   : > { %v721_v13 = vmul.f32 %v720_v11, %v720_v11 }
 0x429   : > { %v722_v14 = vsel %vm347_vm0, %v721_v13, 0.0 }
 0x42a   : > { %723 = vadd.xlane.f32.xlu1 %v722_v14 }
 0x49d   : > { %v724_v15 = vpop.xlane.xlu1 %723 }
 0x49e   : > { %v725_v16 = vmul.f32 %v724_v15, %v1226_v54 }
 0x4a0   : > { %v726_v17 = vadd.f32 1e-05, %v725_v16 }
 0x4a2   : > { %981 = vrsqrt.f32 %v726_v17  ;;  %vm733_vm14 = vweird.f32 %v726_v17 }
 0x4a8   : > { %v982_v12 = vpop.eup %981 }
 0x4a9   : > { %v728_v18 = vmul.f32 %v982_v12, %v726_v17  ;;  %vm734_vm13 = vweird.f32 %v982_v12 }
 0x4aa   : > { %vm735_vm15 = vmor %vm733_vm14, %vm734_vm13 }
 0x4ab   : > { %v729_v19 = vmul.f32 %v982_v12, %v728_v18 }
 0x4ad   : > { %v730_v20 = vmul.f32 0.5, %v729_v19 }
 0x4af   : > { %v731_v21 = vsub.f32 1.5, %v730_v20 }
 0x4b1   : > { %v732_v22 = vmul.f32 %v982_v12, %v731_v21 }
 0x4b3   : > { %v736_v54 = vsel %vm735_vm15, %v982_v12, %v732_v22 }
 0x4b4   : > { %v737_v24 = vmul.f32 %v736_v54, %v720_v11 }
 0x4b6   : > { %v739_v26 = vmul.f32 %v973_v23, %v737_v24 }
 0x4b8   : > { %v741_v27 = vadd.f32 %v974_v25, %v739_v26 }
 0x4ba   : > { %742 = vst.msk [vmem:[%s309_s13] sm:$0xff] %vm347_vm0, %v741_v27 }
 0x4bb   : > { %1010 = shalt.err (!%p1007_p3)
}
 0x4bc   : > { %925 = dma.vmem_to_hbm [thread:$0]  (%p1132_p5), %s757_s9, 128, %s759_s17, %s744_s18  }
 0x4bd PF: > { %p931_p4 = scmp.ge.s32.totalorder %s1045_s30, 2  ;;  %s770_s19 = sand.u32 1, %s1033_s27  }
 0x4be   : > { %s771_s10 = scalar_lea.sflag [#allocation5], %s770_s19 }
 0x4bf   : > { %p928_p7 = pnand %p931_p4, %p1136_p6 }
 0x4c1   : > { %p929_p8 = pneg %p928_p7 }
 0x4c3   : > { %1028 = dma.done.wait (%p929_p8), %s771_s10, 128  }
 0x4c4   : > { %1030 = vsyncadd (%p929_p8), %s771_s10, 4294967168  ;;  %p18_p9 = scmp.ge.s32.totalorder %s1119_s11, 4   ;;  %s1333_s27 = smov %s1037_s28 }
 0x4c5   : > { %s1334_s28 = smov %s1041_s29  ;;  %s1335_s29 = smov %s1130_s14 }
 0x4c6   : > { %s1336_s30 = smov %s1119_s11  ;;  %20 = sbr.rel (!%p18_p9) target bundleno = 3 (0x3), region = 90 }
 0x4cb   :  { %777 = vsyncpa [#allocation5], 1 }
 0x4cc   :  { %779 = vsyncpa [#allocation5 + $0x1], 1 }

// kernel: tpu_custom_call.1
= control target key start
LH: loop header
LB: loop body
LE: loop exit
PB: predicated region body
PF: predicated region fallthrough
CT: control target
= control target key end

     0   :  { %13 = vsyncpa [#allocation5], 0  ;;  %s1322_s0 = inlined_call_operand.vmem [shape: f32[16,32], index: 0, kind: input, shape index: {}]   ;;  %s1323_s1 = inlined_call_operand.vmem [shape: f32[16,64], index: 1, kind: input, shape index: {}]   ;;  %s1324_s2 = inlined_call_operand.vmem [shape: f32[8,64], index: 2, kind: input, shape index: {}]   ;;  %s1325_s3 = inlined_call_operand.vmem [shape: f32[9,128], index: 3, kind: input, shape index: {}]   ;;  %s1326_s4 = inlined_call_operand.vmem [shape: bf16[32,64], index: 4, kind: input, shape index: {}]   ;;  %s1327_s5 = inlined_call_operand.vmem [shape: bf16[64,32], index: 5, kind: input, shape index: {}]   ;;  %s1328_s6 = inlined_call_operand.vmem [shape: bf16[32,128], index: 6, kind: input, shape index: {}]   ;;  %s1329_s7 = inlined_call_operand.vmem [shape: bf16[128,32], index: 7, kind: input, shape index: {}]   ;;  %s1330_s8 = inlined_call_operand.hbm [shape: f32[16,32], index: 8, kind: output, shape index: {}]  }
   0x1   :  { %15 = vsyncpa [#allocation5 + $0x1], 0  ;;  %s1094_s27 = smov 0   ;;  %s1096_s28 = smov 0  }
   0x2   :  { %s1098_s29 = smov 0   ;;  %s1100_s30 = smov 0  }
   0x3 LB: > { %s1115_s9 = sadd.s32 4294967295, %s1045_s30   ;;  %s830_s10 = sadd.s32 4294967294, %s1045_s30   ;;  %s1045_s30 = sphi %s1100_s30, %s1336_s30   ;;  %s1041_s29 = sphi %s1098_s29, %s1335_s29   ;;  %s1037_s28 = sphi %s1096_s28, %s1334_s28   ;;  %s1033_s27 = sphi %s1094_s27, %s1333_s27  }
   0x4   : > { %s1119_s11 = sadd.s32 1, %s1045_s30   ;;  %s206_s12 = sadd.s32 1, %s1041_s29 }
   0x5   : > { %s203_s13 = ssub.s32 %s1045_s30, %s1119_s11  ;;  %p216_p0 = scmp.ne.s32.totalorder %s1041_s29, %s1037_s28 }
   0x6   : > { %p204_p1 = scmp.eq.s32.totalorder %s203_s13, 0  ;;  %p217_p2 = scmp.eq.s32.totalorder %s1115_s9, 1 }
   0x7   : > { %p222_p3 = scmp.ne.s32.totalorder %s1037_s28, %s1033_s27  ;;  %p223_p4 = scmp.eq.s32.totalorder %s830_s10, 1 }
   0x8   : > { %s1130_s14 = scalar_select %p204_p1, %s1041_s29, %s206_s12  }
   0x9   : > { %p1132_p5 = por %p217_p2, %p216_p0  ;;  %p1136_p6 = por %p223_p4, %p222_p3 }
   0xa   : > { %p833_p7 = scmp.ge.s32.totalorder %s1045_s30, 1  ;;  %p273_p8 = scmp.lt.s32.totalorder %s1045_s30, 3 }
   0xc   : > { %p274_p9 = pnand %p833_p7, %p273_p8 }
   0xd   : > { %p310_p10 = scmp.lt.s32.totalorder (!%p274_p9), %s1115_s9, 1  ;;  %s307_s19 = sand.u32 (!%p274_p9), 1, %s1037_s28  }
   0xe   : > { %277 = sbr.rel (%p274_p9) target bundleno = 1213 (0x4bd), region = 52  ;;  %s906_s20 = sshll.u32 (!%p274_p9), %s1115_s9, 3 }
   0xf   : > { %s754_s26 = scalar_lea.hbm (!%p274_p9), %s1330_s8, %s906_s20  ;;  %s744_s18 = scalar_lea.sflag (!%p274_p9), [#allocation5], %s307_s19 }
  0x10   : > { %s758_s17 = sshll.u32 (!%p274_p9), %s754_s26, 4  ;;  %s759_s17 = int_to_ptr.hbm [resolvable:$true] %s758_s17 }
  0x13   : > { %v910_v0 = vld [vmem:[%s1326_s4 + $0x8] sm:$0xff]  ;;  %v909_v1 = vld [vmem:[%s1326_s4] sm:$0xff]  ;;  %s311_s21 = scalar_select %p310_p10, %s1115_s9, 1  ;;  %vm347_vm0 = vcmask 261120   ;;  %v914_v4 = vld [vmem:[%s1327_s5 + $0x18] sm:$0xff]  ;;  %vm366_vm1 = vcmask 523264  }
  0x14   : > { %357 = vmatpush.bf16.msra.mxu0 %v910_v0  ;;  %v1047_v5 = vmov 0.0   ;;  %515 = vmatpush.bf16.msra.mxu1 %v914_v4  ;;  %v913_v6 = vld [vmem:[%s1327_s5 + $0x10] sm:$0xff]  ;;  %v912_v7 = vld [vmem:[%s1327_s5 + $0x8] sm:$0xff]  ;;  %v911_v8 = vld [vmem:[%s1327_s5] sm:$0xff]  ;;  %vm378_vm2 = vcmask 516096   ;;  %vm433_vm3 = vcmask 517120  }
  0x15   : > { %s835_s22 = sshll.u32 %s311_s21, 3  ;;  %368 = vst.msk [vmem:[#allocation3] sm:$0xff] %vm366_vm1, %v1047_v5  ;;  %v966_v9 = vld [vmem:[%s1325_s3] ss:$0 sm:$0xff]  ;;  %v967_v10 = vld [vmem:[%s1325_s3 + $0x1] ss:$0 sm:$0xff] }
  0x16   : > { %s313_s25 = scalar_lea.vmem %s1322_s0, %s835_s22  ;;  %s1181_s12 = scalar_lea.vmem %s1323_s1, %s835_s22  ;;  %v369_v18 = vld [vmem:[%s1324_s2] sm:$0x1]  ;;  %v370_v19 = vld [vmem:[%s1324_s2 + $0x4] sm:$0x1]  ;;  %vm471_vm4 = vcmask 519168  }
  0x17   : > { %v1153_v2 = vld [vmem:[%s313_s25] sm:$0xff]  ;;  %s834_s22 = sshll.u32 %s307_s19, 3  ;;  %s997_s21 = sshra.s32 %s759_s17, 4  ;;  %s998_s21 = int_to_ptr.hbm [resolvable:$true] %s997_s21 }
  0x18   : > { %358 = vmatpush.bf16.msra.mxu0 %v909_v1  ;;  %v329_v3 = vpack.c.bf16 %v1153_v2, %v1153_v2  ;;  %516 = vmatpush.bf16.msra.mxu1 %v913_v6  ;;  %v371_v15 = vld [vmem:[%s1181_s12] sm:$0x1]  ;;  %v383_v16 = vld [vmem:[%s1181_s12 + $0x2] sm:$0x1]  ;;  %v394_v17 = vld [vmem:[%s1181_s12 + $0x4] sm:$0x1]  ;;  %p1004_p0 = scmp.lt.s32.totalorder %s998_s21, %s1330_s8 }
  0x19   : > { %v405_v22 = vld [vmem:[%s1181_s12 + $0x6] sm:$0x1]  ;;  %v418_v53 = vld [vmem:[%s1181_s12 + $0x1] sm:$0x1]  ;;  %v438_v57 = vld [vmem:[%s1181_s12 + $0x5] sm:$0x1] }
  0x1a   : > { %v416_v58 = vld [vmem:[%s1324_s2] sm:$0x3]  ;;  %v417_v59 = vld [vmem:[%s1324_s2 + $0x4] sm:$0x3]  ;;  %s309_s13 = scalar_lea.vmem [#allocation4], %s834_s22  ;;  %s999_s20 = scalar_lea.hbm %s998_s21, 8 }
  0x1b   : > { %845 = vmatmul.msk.bf16.vlgmr.msra.gmra.mxu0 %vm347_vm0, %v329_v3  ;;  %s756_s9 = sshll.u32 %s309_s13, 4  ;;  %p1000_p11 = scmp.ne.s32.totalorder %s998_s21, %s999_s20  ;;  %s757_s9 = int_to_ptr.vmem [resolvable:$true] %s756_s9 }
  0x1c   : > { %517 = vmatpush.bf16.msra.mxu1 %v912_v7  ;;  %v380_v26 = vld [vmem:[#allocation3 + $0x1] sm:$0x1]  ;;  %v391_v33 = vld [vmem:[#allocation3 + $0x3] sm:$0x1]  ;;  %v402_v42 = vld [vmem:[#allocation3 + $0x5] sm:$0x1] }
  0x1d   : > { %v413_v48 = vld [vmem:[#allocation3 + $0x7] sm:$0x1]  ;;  %p1001_p12 = pnand %p1000_p11, %p1132_p5  ;;  %s1003_s22 = scalar_lea.hbm %s1330_s8, 16 }
  0x1e   : > { %p1005_p1 = scmp.lt.s32.totalorder %s1003_s22, %s999_s20 }
  0x1f   : > { %p1002_p13 = pneg %p1001_p12 }
  0x20   : > { %518 = vmatpush.bf16.msra.mxu1 %v911_v8  ;;  %p1006_p2 = por %p1005_p1, %p1004_p0 }
  0x22   : > { %p1007_p3 = pnand %p1006_p2, %p1002_p13 }
  0x98   : > { %v360_v11 = vpop.f32.mrf.mxu0 }
  0x99   : > { %v361_v12 = vadd.f32 %v966_v9, %v360_v11 }
  0x9b   : > { %v365_v13 = vmul.f32 %v967_v10, %v361_v12 }
  0x9d   : > { %367 = vst.msk [vmem:[#allocation2] sm:$0xff] %vm366_vm1, %v365_v13 }
  0xa0   : > { %v362_v14 = vpop.f32.mrf.mxu0 }
  0xa4   : > { %v372_v20 = vld [vmem:[#allocation2] sm:$0x1]  ;;  %v384_v21 = vld [vmem:[#allocation2 + $0x2] sm:$0x1]  ;;  %v395_v25 = vld [vmem:[#allocation2 + $0x4] sm:$0x1] }
  0xa5   : > { %v373_v23 = vmul.f32 %v372_v20, %v371_v15  ;;  %v385_v24 = vmul.f32 %v384_v21, %v383_v16  ;;  %v396_v27 = vmul.f32 %v395_v25, %v394_v17  ;;  %v406_v28 = vld [vmem:[#allocation2 + $0x6] sm:$0x1]  ;;  %v376_v34 = vld [vmem:[#allocation2 + $0x1] sm:$0x1]  ;;  %v388_v35 = vld [vmem:[#allocation2 + $0x3] sm:$0x1] }
  0xa6   : > { %v407_v38 = vmul.f32 %v406_v28, %v405_v22  ;;  %v399_v44 = vld [vmem:[#allocation2 + $0x5] sm:$0x1]  ;;  %v410_v50 = vld [vmem:[#allocation2 + $0x7] sm:$0x1] }
  0xa7   : > { %v374_v29 = vmul.f32 %v373_v23, %v369_v18  ;;  %v375_v30 = vmul.f32 %v373_v23, %v370_v19  ;;  %v386_v31 = vmul.f32 %v385_v24, %v369_v18  ;;  %v387_v32 = vmul.f32 %v385_v24, %v370_v19 }
  0xa8   : > { %v397_v36 = vmul.f32 %v396_v27, %v369_v18  ;;  %v398_v37 = vmul.f32 %v396_v27, %v370_v19  ;;  %v408_v45 = vmul.f32 %v407_v38, %v369_v18  ;;  %v409_v46 = vmul.f32 %v407_v38, %v370_v19 }
  0xa9   : > { %v377_v39 = vadd.f32 %v376_v34, %v374_v29  ;;  %v381_v40 = vadd.f32 %v380_v26, %v375_v30  ;;  %v389_v41 = vadd.f32 %v388_v35, %v386_v31  ;;  %v392_v43 = vadd.f32 %v391_v33, %v387_v32  ;;  %v459_v26 = vld [vmem:[%s1181_s12 + $0x3] sm:$0x1]  ;;  %v458_v32 = vld [vmem:[%s1324_s2 + $0x4] sm:$0xf] }
  0xaa   : > { %v400_v47 = vadd.f32 %v399_v44, %v397_v36  ;;  %v403_v49 = vadd.f32 %v402_v42, %v398_v37  ;;  %v411_v51 = vadd.f32 %v410_v50, %v408_v45  ;;  %v414_v52 = vadd.f32 %v413_v48, %v409_v46  ;;  %v457_v30 = vld [vmem:[%s1324_s2] sm:$0xf] }
  0xab   : > { %379 = vst.msk [vmem:[#allocation2 + $0x1] sm:$0x1] %vm378_vm2, %v377_v39  ;;  %v968_v42 = vld [vmem:[%s1325_s3 + $0x2] ss:$0 sm:$0xff]  ;;  %v1048_v48 = vmov 32.0  }
  0xac   : > { %382 = vst.msk [vmem:[#allocation3 + $0x1] sm:$0x1] %vm378_vm2, %v381_v40  ;;  %975 = vrcp.f32 %v1048_v48 }
  0xad   : > { %390 = vst.msk [vmem:[#allocation2 + $0x3] sm:$0x1] %vm378_vm2, %v389_v41 }
  0xae   : > { %393 = vst.msk [vmem:[#allocation3 + $0x3] sm:$0x1] %vm378_vm2, %v392_v43 }
  0xaf   : > { %401 = vst.msk [vmem:[#allocation2 + $0x5] sm:$0x1] %vm378_vm2, %v400_v47 }
  0xb0   : > { %404 = vst.msk [vmem:[#allocation3 + $0x5] sm:$0x1] %vm378_vm2, %v403_v49 }
  0xb1   : > { %412 = vst.msk [vmem:[#allocation2 + $0x7] sm:$0x1] %vm378_vm2, %v411_v51 }
  0xb2   : > { %415 = vst.msk [vmem:[#allocation3 + $0x7] sm:$0x1] %vm378_vm2, %v414_v52  ;;  %v419_v54 = vld [vmem:[#allocation2 + $0x1] sm:$0x1]  ;;  %v976_v49 = vpop.eup %975 }
  0xb3   : > { %v420_v55 = vmul.f32 %v419_v54, %v418_v53  ;;  %v421_v56 = vld [vmem:[#allocation3 + $0x1] sm:$0x1]  ;;  %v529_v50 = vmul.f32 32.0, %v976_v49  ;;  %vm533_vm5 = vweird.f32 %v976_v49 }
  0xb4   : > { %v422_v60 = vmul.f32 %v421_v56, %v418_v53  ;;  %v431_v12 = vld [vmem:[#allocation2 + $0x2] sm:$0x3] }
  0xb5   : > { %v423_v61 = vperm.slane %v420_v55, 0  ;;  %v435_v13 = vld [vmem:[#allocation3 + $0x2] sm:$0x3]  ;;  %v530_v51 = vsub.f32 1.0, %v529_v50 }
  0xb6   : > { %v425_v62 = vperm.slane %v422_v60, 0  ;;  %v439_v63 = vld [vmem:[#allocation2 + $0x5] sm:$0x1] }
  0xb7   : > { %v424_v0 = vmul.f32 %v423_v61, %v416_v58  ;;  %v428_v1 = vmul.f32 %v423_v61, %v417_v59  ;;  %v440_v3 = vmul.f32 %v439_v63, %v438_v57  ;;  %v441_v4 = vld [vmem:[#allocation3 + $0x5] sm:$0x1]  ;;  %v531_v52 = vmul.f32 %v976_v49, %v530_v51  ;;  %v915_v60 = vld [vmem:[%s1328_s6] sm:$0xff] }
  0xb8   : > { %v426_v5 = vmul.f32 %v425_v62, %v417_v59  ;;  %v429_v6 = vmul.f32 %v425_v62, %v416_v58  ;;  %v442_v7 = vmul.f32 %v441_v4, %v438_v57  ;;  %v451_v22 = vld [vmem:[#allocation2 + $0x6] sm:$0x3] }
  0xb9   : > { %v443_v8 = vperm.slane %v440_v3, 0  ;;  %v454_v23 = vld [vmem:[#allocation3 + $0x6] sm:$0x3]  ;;  %v532_v53 = vadd.f32 %v976_v49, %v531_v52 }
  0xba   : > { %v427_v9 = vsub.f32 %v424_v0, %v426_v5  ;;  %v430_v10 = vadd.f32 %v429_v6, %v428_v1  ;;  %v445_v11 = vperm.slane %v442_v7, 0  ;;  %v969_v7 = vld [vmem:[%s1325_s3 + $0x3] ss:$0 sm:$0xff] }
  0xbb   : > { %v444_v14 = vmul.f32 %v443_v8, %v416_v58  ;;  %v448_v15 = vmul.f32 %v443_v8, %v417_v59  ;;  %v1226_v54 = vsel %vm533_vm5, %v976_v49, %v532_v53 }
  0xbc   : > { %v432_v16 = vadd.f32 %v431_v12, %v427_v9  ;;  %v436_v17 = vadd.f32 %v435_v13, %v430_v10  ;;  %v446_v18 = vmul.f32 %v445_v11, %v417_v59  ;;  %v449_v19 = vmul.f32 %v445_v11, %v416_v58  ;;  %v916_v59 = vld [vmem:[%s1328_s6 + $0x8] sm:$0xff]  ;;  %v970_v10 = vld [vmem:[%s1325_s3 + $0x4] ss:$0 sm:$0xff] }
  0xbd   : > { %585 = vmatpush.bf16.msra.mxu2 %v916_v59 }
  0xbe   : > { %434 = vst.msk [vmem:[#allocation2 + $0x2] sm:$0x3] %vm433_vm3, %v432_v16  ;;  %v447_v20 = vsub.f32 %v444_v14, %v446_v18  ;;  %v450_v21 = vadd.f32 %v449_v19, %v448_v15  ;;  %v924_v14 = vld [vmem:[%s1329_s7 + $0x38] sm:$0xff]  ;;  %v971_v15 = vld [vmem:[%s1325_s3 + $0x5] ss:$0 sm:$0xff]  ;;  %v923_v16 = vld [vmem:[%s1329_s7 + $0x30] sm:$0xff] }
  0xbf   : > { %437 = vst.msk [vmem:[#allocation3 + $0x2] sm:$0x3] %vm433_vm3, %v436_v17  ;;  %702 = vmatpush.bf16.msra.mxu3 %v924_v14  ;;  %v922_v19 = vld [vmem:[%s1329_s7 + $0x28] sm:$0xff] }
  0xc0   : > { %v452_v24 = vadd.f32 %v451_v22, %v447_v20  ;;  %v455_v25 = vadd.f32 %v454_v23, %v450_v21  ;;  %v921_v22 = vld [vmem:[%s1329_s7 + $0x20] sm:$0xff] }
  0xc1   : > { %586 = vmatpush.bf16.msra.mxu2 %v915_v60 }
  0xc2   : > { %453 = vst.msk [vmem:[#allocation2 + $0x6] sm:$0x3] %vm433_vm3, %v452_v24 }
  0xc3   : > { %456 = vst.msk [vmem:[#allocation3 + $0x6] sm:$0x3] %vm433_vm3, %v455_v25  ;;  %703 = vmatpush.bf16.msra.mxu3 %v923_v16 }
  0xc5   : > { %v460_v27 = vld [vmem:[#allocation2 + $0x3] sm:$0x1] }
  0xc6   : > { %v461_v28 = vmul.f32 %v460_v27, %v459_v26  ;;  %v462_v29 = vld [vmem:[#allocation3 + $0x3] sm:$0x1]  ;;  %v920_v27 = vld [vmem:[%s1329_s7 + $0x18] sm:$0xff] }
  0xc7   : > { %v463_v31 = vmul.f32 %v462_v29, %v459_v26  ;;  %704 = vmatpush.bf16.msra.mxu3 %v922_v19 }
  0xc8   : > { %v464_v33 = vperm.slane %v461_v28, 0 }
  0xc9   : > { %v466_v34 = vperm.slane %v463_v31, 0  ;;  %v469_v38 = vld [vmem:[#allocation2 + $0x4] sm:$0xf] }
  0xca   : > { %v465_v35 = vmul.f32 %v464_v33, %v457_v30 }
  0xcb   : > { %v467_v36 = vmul.f32 %v466_v34, %v458_v32  ;;  %705 = vmatpush.bf16.msra.mxu3 %v921_v22  ;;  %v919_v32 = vld [vmem:[%s1329_s7 + $0x10] sm:$0xff] }
  0xcd   : > { %v468_v37 = vsub.f32 %v465_v35, %v467_v36  ;;  %v918_v36 = vld [vmem:[%s1329_s7 + $0x8] sm:$0xff] }
  0xcf   : > { %v470_v39 = vadd.f32 %v469_v38, %v468_v37  ;;  %706 = vmatpush.bf16.msra.mxu3 %v920_v27 }
  0xd1   : > { %472 = vst.msk [vmem:[#allocation2 + $0x4] sm:$0xf] %vm471_vm4, %v470_v39 }
  0xd3   : > { %707 = vmatpush.bf16.msra.mxu3 %v919_v32 }
  0xd7   : > { %708 = vmatpush.bf16.msra.mxu3 %v918_v36 }
  0xd8   : > { %v473_v40 = vld [vmem:[#allocation2] sm:$0xff] }
  0xd9   : > { %v474_v41 = vpack.c.bf16 %v473_v40, %v473_v40  ;;  %v917_v40 = vld [vmem:[%s1329_s7] sm:$0xff] }
  0xdb   : > { %862 = vmatmul.msk.bf16.vlgmr.msra.gmra.mxu1 %vm366_vm1, %v474_v41  ;;  %709 = vmatpush.bf16.msra.mxu3 %v917_v40 }
 0x158   : > { %v520_v43 = vpop.f32.mrf.mxu1 }
 0x159   : > { %v521_v44 = vadd.f32 %v968_v42, %v520_v43 }
 0x15b   : > { %v524_v45 = vadd.f32 %v521_v44, %v1153_v2 }
 0x15d   : > { %v525_v46 = vsel %vm347_vm0, %v524_v45, 0.0 }
 0x15e   : > { %526 = vadd.xlane.f32.xlu0 %v525_v46 }
 0x160   : > { %v522_v47 = vpop.f32.mrf.mxu1 }
 0x1d1   : > { %v527_v55 = vpop.xlane.xlu0 %526 }
 0x1d2   : > { %v535_v56 = vmul.f32 %v1226_v54, %v527_v55 }
 0x1d4   : > { %v536_v57 = vsub.f32 %v524_v45, %v535_v56 }
 0x1d6   : > { %v537_v58 = vmul.f32 %v536_v57, %v536_v57 }
 0x1d8   : > { %v538_v2 = vsel %vm347_vm0, %v537_v58, 0.0 }
 0x1d9   : > { %539 = vadd.xlane.f32.xlu0 %v538_v2 }
 0x24c   : > { %v540_v61 = vpop.xlane.xlu0 %539 }
 0x24d   : > { %v541_v62 = vmul.f32 %v540_v61, %v1226_v54 }
 0x24f   : > { %v542_v63 = vadd.f32 1e-05, %v541_v62 }
 0x251   : > { %977 = vrsqrt.f32 %v542_v63  ;;  %vm549_vm7 = vweird.f32 %v542_v63 }
 0x257   : > { %v978_v0 = vpop.eup %977 }
 0x258   : > { %v544_v1 = vmul.f32 %v978_v0, %v542_v63  ;;  %vm550_vm6 = vweird.f32 %v978_v0 }
 0x259   : > { %vm551_vm8 = vmor %vm549_vm7, %vm550_vm6 }
 0x25a   : > { %v545_v3 = vmul.f32 %v978_v0, %v544_v1 }
 0x25c   : > { %v546_v4 = vmul.f32 0.5, %v545_v3  ;;  %v972_v3 = vld [vmem:[%s1325_s3 + $0x6] ss:$0 sm:$0xff] }
 0x25e   : > { %v547_v5 = vsub.f32 1.5, %v546_v4 }
 0x260   : > { %v548_v6 = vmul.f32 %v978_v0, %v547_v5 }
 0x262   : > { %v552_v8 = vsel %vm551_vm8, %v978_v0, %v548_v6 }
 0x263   : > { %v553_v9 = vmul.f32 %v552_v8, %v536_v57 }
 0x265   : > { %v555_v11 = vmul.f32 %v969_v7, %v553_v9 }
 0x267   : > { %v1243_v12 = vadd.f32 %v970_v10, %v555_v11 }
 0x269   : > { %v558_v13 = vpack.c.bf16 %v1243_v12, %v1243_v12 }
 0x26b   : > { %871 = vmatmul.msk.bf16.vlgmr.msra.gmra.mxu2 %vm347_vm0, %v558_v13 }
 0x2ee   : > { %v588_v17 = vpop.f32.mrf.mxu2 }
 0x2ef   : > { %v589_v18 = vadd.f32 %v971_v15, %v588_v17 }
 0x2f1   : > { %v593_v20 = vmul.f32 0.70710677, %v589_v18  ;;  %v592_v62 = vmul.f32 0.5, %v589_v18 }
 0x2f3   : > { %v594_v21 = vmul.f32 %v593_v20, %v593_v20 }
 0x2f5   : > { %v595_v23 = vmin.f32 %v594_v21, 16.0 }
 0x2f6   : > { %v590_v24 = vpop.f32.mrf.mxu2 }
 0x2f7   : > { %v596_v25 = vmul.f32 2.1237322e-06, %v595_v23  ;;  %v607_v26 = vmul.f32 3.8918573e-05, %v595_v23 }
 0x2f9   : > { %v597_v28 = vadd.f32 0.00028619796, %v596_v25  ;;  %v608_v29 = vadd.f32 0.001143296, %v607_v26  ;;  %v974_v25 = vld [vmem:[%s1325_s3 + $0x8] ss:$0 sm:$0xff] }
 0x2fb   : > { %v598_v30 = vmul.f32 %v597_v28, %v595_v23  ;;  %v609_v31 = vmul.f32 %v608_v29, %v595_v23 }
 0x2fd   : > { %v610_v33 = vadd.f32 0.014752088, %v609_v31  ;;  %v599_v34 = vadd.f32 0.0036580483, %v598_v30 }
 0x2ff   : > { %v611_v35 = vmul.f32 %v610_v33, %v595_v23  ;;  %v600_v38 = vmul.f32 %v599_v34, %v595_v23 }
 0x301   : > { %v612_v37 = vadd.f32 0.112945676, %v611_v35  ;;  %v601_v42 = vadd.f32 0.05243302, %v600_v38 }
 0x303   : > { %v613_v39 = vmul.f32 %v612_v37, %v595_v23  ;;  %v602_v45 = vmul.f32 %v601_v42, %v595_v23 }
 0x305   : > { %v614_v41 = vadd.f32 0.4994258, %v613_v39  ;;  %v603_v46 = vadd.f32 0.18741608, %v602_v45 }
 0x307   : > { %v615_v43 = vmul.f32 %v614_v41, %v595_v23  ;;  %v604_v48 = vmul.f32 %v603_v46, %v595_v23  ;;  %v973_v23 = vld [vmem:[%s1325_s3 + $0x7] ss:$0 sm:$0xff] }
 0x309   : > { %v616_v44 = vadd.f32 1.0, %v615_v43  ;;  %v605_v52 = vadd.f32 1.1283791, %v604_v48 }
 0x30b   : > { %979 = vrcp.f32 %v616_v44  ;;  %v628_v51 = vand.u32 2147483648, %v616_v44  ;;  %v626_v55 = vand.u32 2147483647, %v616_v44  ;;  %vm622_vm10 = vweird.f32 %v616_v44 }
 0x30c   : > { %v606_v58 = vmul.f32 %v605_v52, %v593_v20 }
 0x30d   : > { %v629_v57 = vor.u32 1.1754944e-38, %v628_v51  ;;  %vm627_vm12 = vcmp.eq.f32.partialorder %v626_v55, 8.507059e+37 }
 0x311   : > { %v980_v47 = vpop.eup %979 }
 0x312   : > { %v618_v49 = vmul.f32 %v980_v47, %v616_v44  ;;  %vm623_vm9 = vweird.f32 %v980_v47 }
 0x313   : > { %vm624_vm11 = vmor %vm622_vm10, %vm623_vm9 }
 0x314   : > { %v619_v50 = vsub.f32 1.0, %v618_v49 }
 0x316   : > { %v620_v53 = vmul.f32 %v980_v47, %v619_v50 }
 0x318   : > { %v621_v56 = vadd.f32 %v980_v47, %v620_v53 }
 0x31a   : > { %v625_v2 = vsel %vm624_vm11, %v980_v47, %v621_v56 }
 0x31b   : > { %v630_v59 = vsel %vm627_vm12, %v629_v57, %v625_v2 }
 0x31c   : > { %v631_v60 = vmul.f32 %v630_v59, %v606_v58 }
 0x31e   : > { %v872_v61 = vclamps-f32 %v631_v60, 1.0 }
 0x320   : > { %v634_v63 = vadd.f32 1.0, %v872_v61 }
 0x322   : > { %v635_v0 = vmul.f32 %v634_v63, %v592_v62 }
 0x324   : > { %v636_v1 = vpack.c.bf16 %v635_v0, %v635_v0 }
 0x326   : > { %710 = vmatmul.bf16.vlgmr.msra.gmra.mxu3 %v636_v1 }
 0x3a9   : > { %v711_v4 = vpop.f32.mrf.mxu3 }
 0x3aa   : > { %v712_v5 = vadd.f32 %v972_v3, %v711_v4 }
 0x3ac   : > { %v715_v6 = vadd.f32 %v712_v5, %v1243_v12 }
 0x3ae   : > { %v716_v7 = vsel %vm347_vm0, %v715_v6, 0.0 }
 0x3af   : > { %717 = vadd.xlane.f32.xlu1 %v716_v7 }
 0x3b1   : > { %v713_v8 = vpop.f32.mrf.mxu3 }
 0x422   : > { %v718_v9 = vpop.xlane.xlu1 %717 }
 0x423   : > { %v719_v10 = vmul.f32 %v718_v9, %v1226_v54 }
 0x425   : > { %v720_v11 = vsub.f32 %v715_v6, %v719_v10 }
 0x427   : > { %v721_v13 = vmul.f32 %v720_v11, %v720_v11 }
 0x429   : > { %v722_v14 = vsel %vm347_vm0, %v721_v13, 0.0 }
 0x42a   : > { %723 = vadd.xlane.f32.xlu1 %v722_v14 }
 0x49d   : > { %v724_v15 = vpop.xlane.xlu1 %723 }
 0x49e   : > { %v725_v16 = vmul.f32 %v724_v15, %v1226_v54 }
 0x4a0   : > { %v726_v17 = vadd.f32 1e-05, %v725_v16 }
 0x4a2   : > { %981 = vrsqrt.f32 %v726_v17  ;;  %vm733_vm14 = vweird.f32 %v726_v17 }
 0x4a8   : > { %v982_v12 = vpop.eup %981 }
 0x4a9   : > { %v728_v18 = vmul.f32 %v982_v12, %v726_v17  ;;  %vm734_vm13 = vweird.f32 %v982_v12 }
 0x4aa   : > { %vm735_vm15 = vmor %vm733_vm14, %vm734_vm13 }
 0x4ab   : > { %v729_v19 = vmul.f32 %v982_v12, %v728_v18 }
 0x4ad   : > { %v730_v20 = vmul.f32 0.5, %v729_v19 }
 0x4af   : > { %v731_v21 = vsub.f32 1.5, %v730_v20 }
 0x4b1   : > { %v732_v22 = vmul.f32 %v982_v12, %v731_v21 }
 0x4b3   : > { %v736_v54 = vsel %vm735_vm15, %v982_v12, %v732_v22 }
 0x4b4   : > { %v737_v24 = vmul.f32 %v736_v54, %v720_v11 }
 0x4b6   : > { %v739_v26 = vmul.f32 %v973_v23, %v737_v24 }
 0x4b8   : > { %v741_v27 = vadd.f32 %v974_v25, %v739_v26 }
 0x4ba   : > { %742 = vst.msk [vmem:[%s309_s13] sm:$0xff] %vm347_vm0, %v741_v27 }
 0x4bb   : > { %1010 = shalt.err (!%p1007_p3)
}
 0x4bc   : > { %925 = dma.vmem_to_hbm [thread:$0]  (%p1132_p5), %s757_s9, 128, %s759_s17, %s744_s18  }
 0x4bd PF: > { %p931_p4 = scmp.ge.s32.totalorder %s1045_s30, 2  ;;  %s770_s19 = sand.u32 1, %s1033_s27  }
 0x4be   : > { %s771_s10 = scalar_lea.sflag [#allocation5], %s770_s19 }
 0x4bf   : > { %p928_p7 = pnand %p931_p4, %p1136_p6 }
 0x4c1   : > { %p929_p8 = pneg %p928_p7 }
 0x4c3   : > { %1028 = dma.done.wait (%p929_p8), %s771_s10, 128  }
 0x4c4   : > { %1030 = vsyncadd (%p929_p8), %s771_s10, 4294967168  ;;  %p18_p9 = scmp.ge.s32.totalorder %s1119_s11, 4   ;;  %s1333_s27 = smov %s1037_s28 }
 0x4c5   : > { %s1334_s28 = smov %s1041_s29  ;;  %s1335_s29 = smov %s1130_s14 }
 0x4c6   : > { %s1336_s30 = smov %s1119_s11  ;;  %20 = sbr.rel (!%p18_p9) target bundleno = 3 (0x3), region = 90 }
 0x4cb   :  { %777 = vsyncpa [#allocation5], 1 }
 0x4cc   :  { %779 = vsyncpa [#allocation5 + $0x1], 1 }

</bundles_post_ra>
